<compile_context>
chip_gen: v7x
topology: tpu7x:2x2x1
jax: 0.10.0
libtpu: 0.0.40
codegen_flags: <defaults>
</compile_context>

<pallas_src>
import functools

import jax
import jax.numpy as jnp
from jax import lax
from jax.experimental import pallas as pl
from jax.experimental.pallas import tpu as pltpu


# ----------------------------------------------------------------------------
# In-kernel helpers
# ----------------------------------------------------------------------------
def _gat_layer(x, mask_ref, M_ref, W, a_self, a_neigh, alpha):
    """One GATLayer: h = xW; masked-softmax attention; aggregation; ELU."""
    # Small matmul (F_in/H wide): keep f32 operands. TODO(synk): cast to bf16 at
    # compute-bound feature widths.
    h = jnp.dot(x, W, preferred_element_type=jnp.float32)              # (N, F_out)

    # attn[i, j] = (h[i] . a_self) + (h[j] . a_neigh)
    # Both terms come straight from the MXU (no XLU reductions, no transpose).
    attn_self = lax.dot_general(h, a_self, (((1,), (1,)), ((), ())),
                                preferred_element_type=jnp.float32)    # (N, 1)
    attn_neigh = lax.dot_general(a_neigh, h, (((1,), (1,)), ((), ())),
                                 preferred_element_type=jnp.float32)   # (1, N)
    attn = (attn_self + attn_neigh) * M_ref[0]                         # (N, N)
    # LeakyReLU(negative_slope = alpha)
    attn = jnp.where(attn > 0, attn, alpha * attn)

    # Masked row softmax. Softmax is shift-invariant, so the row max over all
    # logits is a valid (and stable: exponents <= 0) shift. The {0,1} mask is a
    # single vmul (no cmp/select, no -9e15 tensor), re-read from VMEM per layer.
    row_max = jnp.max(attn, axis=1, keepdims=True)                     # (N, 1)
    e = jnp.exp(attn - row_max) * mask_ref[0]                          # (N, N)
    denom = jnp.sum(e, axis=1, keepdims=True)                          # (N, 1)
    # Guard rows with no unmasked neighbors (demo graphs add self loops, so this
    # never fires there); exact reciprocal: only (N,1) work next to (N,N) exp.
    denom = jnp.maximum(denom, jnp.float32(1e-30))
    attention = e * pl.reciprocal(denom)

    # N-wide aggregation matmul: bf16 MXU operands, f32 accumulation.
    h_prime = jnp.dot(attention.astype(jnp.bfloat16), h.astype(jnp.bfloat16),
                      preferred_element_type=jnp.float32)              # (N, F_out)
    # F.elu (alpha = 1.0)
    return jnp.where(h_prime > 0, h_prime, jnp.exp(h_prime) - 1.0)


def _l2_normalize_rows(h):
    """torch.nn.functional.normalize(h, p=2, dim=1), eps = 1e-12."""
    sumsq = jnp.sum(h * h, axis=1, keepdims=True)
    return h * lax.rsqrt(jnp.maximum(sumsq, jnp.float32(1e-24)))       # EUP rsqrt


# ----------------------------------------------------------------------------
# Main kernel: grid=(2,) over the two independent graph views (parallel on v7x)
# ----------------------------------------------------------------------------
def _gat_view_kernel(mask_ref, M_ref, x_ref,
                     W1_ref, as1_ref, an1_ref,
                     W2_ref, as2_ref, an2_ref,
                     g_ref, zv_ref, *, alpha):
    x = x_ref[...]                                                     # (N, F_in)

    h1 = _gat_layer(x, mask_ref, M_ref, W1_ref[...], as1_ref[...], an1_ref[...],
                    alpha)
    h2 = _gat_layer(h1, mask_ref, M_ref, W2_ref[...], as2_ref[...], an2_ref[...],
                    alpha)
    zb = _l2_normalize_rows(h2)                                        # (N, E)

    # Per-view outputs: no cross-step dependency -> view axis is "parallel".
    zv_ref[0] = zb
    zb_bf = zb.astype(jnp.bfloat16)
    g_ref[0] = lax.dot_general(zb_bf, zb_bf, (((1,), (1,)), ((), ())),
                               preferred_element_type=jnp.float32)     # zb @ zb.T


# ----------------------------------------------------------------------------
# Tiny epilogue kernel: A_pred = sigmoid(G0 + G1), z = [z1 | z2]
# ----------------------------------------------------------------------------
def _decoder_kernel(g_ref, zv_ref, apred_ref, z_ref):
    apred_ref[...] = jax.nn.sigmoid(g_ref[0] + g_ref[1])
    z_ref[...] = jnp.concatenate([zv_ref[0], zv_ref[1]], axis=1)


# ----------------------------------------------------------------------------
# Wrapper
# ----------------------------------------------------------------------------
def gat_forward(params, x, adj, M1, img, M2, alpha):
    W1, a_s1, a_n1, W2, a_s2, a_n2 = params
    N, F_in = x.shape
    H = W1.shape[1]
    E = W2.shape[1]

    # Stack the two graph views so the kernel's grid axis streams them.
    # adj is only ever used as a >0 mask -> precompute an exact {0,1} bf16 mask
    # (halves the per-view adjacency DMA). M stays f32 (feeds the exponent).
    masks = (jnp.stack([adj, img]) > 0).astype(jnp.bfloat16)           # (2, N, N)
    Ms = jnp.stack([M1, M2]).astype(jnp.float32)                       # (2, N, N)

    kernel = functools.partial(_gat_view_kernel, alpha=alpha)

    # Advisory cost hint so XLA schedules this small fused call tightly.
    flops = 2 * (2 * N * F_in * H + 4 * N * H + 2 * N * N * H
                 + 2 * N * H * E + 4 * N * E + 2 * N * N * E
                 + 2 * N * N * E) + 2 * N * N
    transcendentals = 2 * (2 * N * N + N * H + N * E) + N * N
    bytes_accessed = (2 * N * N * 2 + 2 * N * N * 4                    # masks, M
                      + 4 * (N * F_in + F_in * H + H * E + 2 * (H + E))
                      + 4 * (2 * N * N + 2 * N * E))                   # G, z_v

    grid_spec = pltpu.PrefetchScalarGridSpec(
        num_scalar_prefetch=0,
        grid=(2,),
        in_specs=[
            pl.BlockSpec((1, N, N), lambda b: (b, 0, 0)),   # mask (view b, bf16)
            pl.BlockSpec((1, N, N), lambda b: (b, 0, 0)),   # M    (view b)
            pl.BlockSpec((N, F_in), lambda b: (0, 0)),      # x      (shared)
            pl.BlockSpec((F_in, H), lambda b: (0, 0)),      # W1     (shared)
            pl.BlockSpec((1, H), lambda b: (0, 0)),         # a_self  layer 1
            pl.BlockSpec((1, H), lambda b: (0, 0)),         # a_neigh layer 1
            pl.BlockSpec((H, E), lambda b: (0, 0)),         # W2     (shared)
            pl.BlockSpec((1, E), lambda b: (0, 0)),         # a_self  layer 2
            pl.BlockSpec((1, E), lambda b: (0, 0)),         # a_neigh layer 2
        ],
        out_specs=(
            pl.BlockSpec((1, N, N), lambda b: (b, 0, 0)),   # per-view Gram
            pl.BlockSpec((1, N, E), lambda b: (b, 0, 0)),   # per-view embedding
        ),
    )

    G, zv = pl.pallas_call(
        kernel,
        out_shape=(jax.ShapeDtypeStruct((2, N, N), jnp.float32),
                   jax.ShapeDtypeStruct((2, N, E), jnp.float32)),
        grid_spec=grid_spec,
        compiler_params=pltpu.CompilerParams(
            # Views are fully independent now -> shardable across v7x's 2 TCs;
            # on v5e/v6e (1 TC) this is simply two sequential iterations.
            dimension_semantics=("parallel",),
        ),
        cost_estimate=pl.CostEstimate(flops=flops,
                                      transcendentals=transcendentals,
                                      bytes_accessed=bytes_accessed),
    )(masks, Ms, x, W1, a_s1, a_n1, W2, a_s2, a_n2)

    # Tiny grid-less epilogue: whole arrays fit VMEM trivially.
    A_pred, z = pl.pallas_call(
        _decoder_kernel,
        out_shape=(jax.ShapeDtypeStruct((N, N), jnp.float32),
                   jax.ShapeDtypeStruct((N, 2 * E), jnp.float32)),
    )(G, zv)
    return A_pred, z


# ----------------------------------------------------------------------------
# Pure-JAX reference (mirrors the PyTorch forward) for a correctness check
# ----------------------------------------------------------------------------
def _gat_layer_ref(x, adj, M, W, a_self_row, a_neigh_row, alpha):
    h = x @ W
    attn_self = jnp.sum(h * a_self_row, axis=1, keepdims=True)
    attn_neigh = jnp.sum(h * a_neigh_row, axis=1, keepdims=True)
    attn = attn_self + attn_neigh.T
    attn = attn * M
    attn = jnp.where(attn > 0, attn, alpha * attn)
    scores = jnp.where(adj > 0, attn, -9e15)
    attention = jax.nn.softmax(scores, axis=1)
    hp = attention @ h
    return jnp.where(hp > 0, hp, jnp.exp(hp) - 1.0)


def _gat_forward_ref(params, x, adj, M1, img, M2, alpha):
    W1, a_s1, a_n1, W2, a_s2, a_n2 = params
    h1 = _gat_layer_ref(x, adj, M1, W1, a_s1, a_n1, alpha)
    h2 = _gat_layer_ref(h1, adj, M1, W2, a_s2, a_n2, alpha)
    h3 = _gat_layer_ref(x, img, M2, W1, a_s1, a_n1, alpha)
    h4 = _gat_layer_ref(h3, img, M2, W2, a_s2, a_n2, alpha)

    def norm(h):
        return h / jnp.maximum(jnp.linalg.norm(h, axis=1, keepdims=True), 1e-12)

    z = jnp.concatenate([norm(h2), norm(h4)], axis=1)
    return jax.nn.sigmoid(z @ z.T), z


# ----------------------------------------------------------------------------
def _xavier_uniform(key, shape, gain=1.414):
    fan_in, fan_out = shape
    bound = gain * (6.0 / (fan_in + fan_out)) ** 0.5
    return jax.random.uniform(key, shape, jnp.float32, -bound, bound)


if __name__ == "__main__":
    # N chosen as a multiple of 128 so the dense N x N tensors are lane-dense.
    N, F_IN, HIDDEN, EMB, ALPHA = 128, 32, 16, 8, 0.2

    key = jax.random.PRNGKey(0)
    keys = jax.random.split(key, 12)

    # Parameters (xavier-style init; a_self / a_neighs stored as (1, F_out) rows)
    W1 = _xavier_uniform(keys[0], (F_IN, HIDDEN))
    a_s1 = _xavier_uniform(keys[1], (1, HIDDEN))
    a_n1 = _xavier_uniform(keys[2], (1, HIDDEN))
    W2 = _xavier_uniform(keys[3], (HIDDEN, EMB))
    a_s2 = _xavier_uniform(keys[4], (1, EMB))
    a_n2 = _xavier_uniform(keys[5], (1, EMB))
    params = (W1, a_s1, a_n1, W2, a_s2, a_n2)

    # Inputs
    x = jax.random.normal(keys[6], (N, F_IN), jnp.float32)
    eye = jnp.eye(N, dtype=jnp.float32)

    a_raw = (jax.random.uniform(keys[7], (N, N)) < 0.15).astype(jnp.float32)
    adj = jnp.clip(a_raw + a_raw.T + eye, 0.0, 1.0)          # symmetric + self loops

    i_raw = (jax.random.uniform(keys[8], (N, N)) < 0.15).astype(jnp.float32)
    img = jnp.clip(i_raw + i_raw.T + eye, 0.0, 1.0)

    M1 = jax.random.uniform(keys[9], (N, N), jnp.float32)
    M2 = jax.random.uniform(keys[10], (N, N), jnp.float32)

    A_pred, z = jax.jit(functools.partial(gat_forward, alpha=ALPHA))(
        params, x, adj, M1, img, M2)
    jax.block_until_ready((A_pred, z))

    A_ref, z_ref = _gat_forward_ref(params, x, adj, M1, img, M2, ALPHA)
    assert A_pred.shape == (N, N) and z.shape == (N, 2 * EMB)
    assert not bool(jnp.any(jnp.isnan(A_pred))) and not bool(jnp.any(jnp.isnan(z)))
    # Tolerance accounts for bf16 MXU operands on the aggregation / Gram matmuls
    # (f32 accumulation) and EUP rsqrt in the normalize; outputs are O(1).
    assert jnp.allclose(A_pred, A_ref, rtol=3e-2, atol=3e-2)
    assert jnp.allclose(z, z_ref, rtol=3e-2, atol=3e-2)

    print("KERNEL_OK")
</pallas_src>

<mosaic_0001>
module attributes {stable_mosaic.version = 11 : i64} {
  func.func @_decoder_kernel(%arg0: memref<2x128x128xf32, #tpu.memory_space<vmem>>, %arg1: memref<2x128x8xf32, #tpu.memory_space<vmem>>, %arg2: memref<128x128xf32, #tpu.memory_space<vmem>>, %arg3: memref<128x16xf32, #tpu.memory_space<vmem>>) attributes {dimension_semantics = [], scalar_prefetch = 0 : i64, scratch_operands = 0 : i64, tpu.core_type = #tpu.core_type<tc>} {
    %c0 = arith.constant 0 : index
    %c0_0 = arith.constant 0 : index
    %c0_1 = arith.constant 0 : index
    %0 = vector.load %arg0[%c0, %c0_0, %c0_1] : memref<2x128x128xf32, #tpu.memory_space<vmem>>, vector<1x128x128xf32>
    %1 = vector.shape_cast %0 : vector<1x128x128xf32> to vector<128x128xf32>
    %c1 = arith.constant 1 : index
    %c0_2 = arith.constant 0 : index
    %c0_3 = arith.constant 0 : index
    %2 = vector.load %arg0[%c1, %c0_2, %c0_3] : memref<2x128x128xf32, #tpu.memory_space<vmem>>, vector<1x128x128xf32>
    %3 = vector.shape_cast %2 : vector<1x128x128xf32> to vector<128x128xf32>
    %4 = arith.addf %1, %3 : vector<128x128xf32>
    %5 = arith.negf %4 : vector<128x128xf32>
    %6 = math.exp %5 : vector<128x128xf32>
    %cst = arith.constant 1.000000e+00 : f32
    %7 = vector.broadcast %cst : f32 to vector<128x128xf32>
    %8 = arith.addf %7, %6 : vector<128x128xf32>
    %9 = arith.divf %7, %8 : vector<128x128xf32>
    %c0_4 = arith.constant 0 : index
    %c0_5 = arith.constant 0 : index
    %10 = vector.load %arg2[%c0_4, %c0_5] : memref<128x128xf32, #tpu.memory_space<vmem>>, vector<128x128xf32>
    tpu.vector_store %arg2[%c0_4, %c0_5], %9 {strides = array<i32>} : memref<128x128xf32, #tpu.memory_space<vmem>>, vector<128x128xf32>,
    %c0_6 = arith.constant 0 : index
    %c0_7 = arith.constant 0 : index
    %c0_8 = arith.constant 0 : index
    %11 = vector.load %arg1[%c0_6, %c0_7, %c0_8] : memref<2x128x8xf32, #tpu.memory_space<vmem>>, vector<1x128x8xf32>
    %12 = vector.shape_cast %11 : vector<1x128x8xf32> to vector<128x8xf32>
    %c1_9 = arith.constant 1 : index
    %c0_10 = arith.constant 0 : index
    %c0_11 = arith.constant 0 : index
    %13 = vector.load %arg1[%c1_9, %c0_10, %c0_11] : memref<2x128x8xf32, #tpu.memory_space<vmem>>, vector<1x128x8xf32>
    %14 = vector.shape_cast %13 : vector<1x128x8xf32> to vector<128x8xf32>
    %15 = tpu.concatenate %12, %14 in 1 : vector<128x8xf32>, vector<128x8xf32> -> vector<128x16xf32>
    %c0_12 = arith.constant 0 : index
    %c0_13 = arith.constant 0 : index
    %16 = vector.load %arg3[%c0_12, %c0_13] : memref<128x16xf32, #tpu.memory_space<vmem>>, vector<128x16xf32>
    tpu.vector_store %arg3[%c0_12, %c0_13], %15 {strides = array<i32>} : memref<128x16xf32, #tpu.memory_space<vmem>>, vector<128x16xf32>,
    return
  }
}

module attributes {stable_mosaic.version = 11 : i64} {
  func.func @_gat_view_kernel(%arg0: i32, %arg1: memref<1x128x128xbf16, #tpu.memory_space<vmem>>, %arg2: memref<1x128x128xf32, #tpu.memory_space<vmem>>, %arg3: memref<128x32xf32, #tpu.memory_space<vmem>>, %arg4: memref<32x16xf32, #tpu.memory_space<vmem>>, %arg5: memref<1x16xf32, #tpu.memory_space<vmem>>, %arg6: memref<1x16xf32, #tpu.memory_space<vmem>>, %arg7: memref<16x8xf32, #tpu.memory_space<vmem>>, %arg8: memref<1x8xf32, #tpu.memory_space<vmem>>, %arg9: memref<1x8xf32, #tpu.memory_space<vmem>>, %arg10: memref<1x128x128xf32, #tpu.memory_space<vmem>>, %arg11: memref<1x128x8xf32, #tpu.memory_space<vmem>>) attributes {dimension_semantics = [#tpu.dimension_semantics<parallel>], iteration_bounds = array<i64: 2>, scalar_prefetch = 0 : i64, scratch_operands = 0 : i64, tpu.core_type = #tpu.core_type<tc>, window_params = [{transform_indices = @transform_0, window_bounds = array<i64: 1, 128, 128>}, {transform_indices = @transform_1, window_bounds = array<i64: 1, 128, 128>}, {pipeline_mode = #tpu.pipeline_mode<synchronous>, transform_indices = @transform_2, window_bounds = array<i64: 128, 32>}, {pipeline_mode = #tpu.pipeline_mode<synchronous>, transform_indices = @transform_3, window_bounds = array<i64: 32, 16>}, {pipeline_mode = #tpu.pipeline_mode<synchronous>, transform_indices = @transform_4, window_bounds = array<i64: 1, 16>}, {pipeline_mode = #tpu.pipeline_mode<synchronous>, transform_indices = @transform_5, window_bounds = array<i64: 1, 16>}, {pipeline_mode = #tpu.pipeline_mode<synchronous>, transform_indices = @transform_6, window_bounds = array<i64: 16, 8>}, {pipeline_mode = #tpu.pipeline_mode<synchronous>, transform_indices = @transform_7, window_bounds = array<i64: 1, 8>}, {pipeline_mode = #tpu.pipeline_mode<synchronous>, transform_indices = @transform_8, window_bounds = array<i64: 1, 8>}, {transform_indices = @transform_9, window_bounds = array<i64: 1, 128, 128>}, {transform_indices = @transform_10, window_bounds = array<i64: 1, 128, 8>}]} {
    %c0 = arith.constant 0 : index
    %c0_0 = arith.constant 0 : index
    %0 = vector.load %arg3[%c0, %c0_0] : memref<128x32xf32, #tpu.memory_space<vmem>>, vector<128x32xf32>
    %c0_1 = arith.constant 0 : index
    %c0_2 = arith.constant 0 : index
    %1 = vector.load %arg4[%c0_1, %c0_2] : memref<32x16xf32, #tpu.memory_space<vmem>>, vector<32x16xf32>
    %c0_3 = arith.constant 0 : index
    %c0_4 = arith.constant 0 : index
    %2 = vector.load %arg5[%c0_3, %c0_4] : memref<1x16xf32, #tpu.memory_space<vmem>>, vector<1x16xf32>
    %c0_5 = arith.constant 0 : index
    %c0_6 = arith.constant 0 : index
    %3 = vector.load %arg6[%c0_5, %c0_6] : memref<1x16xf32, #tpu.memory_space<vmem>>, vector<1x16xf32>
    %cst = arith.constant dense<0.000000e+00> : vector<128x16xf32>
    %4 = tpu.matmul %0, %1, %cst {dimension_numbers = #tpu.dot_dimension_numbers<[1], [0], [0], [1], [0, 0, 1, 1], [], []>} : vector<128x32xf32>, vector<32x16xf32>, vector<128x16xf32> -> vector<128x16xf32>
    %cst_7 = arith.constant dense<0.000000e+00> : vector<128x1xf32>
    %5 = tpu.matmul %4, %2, %cst_7 {dimension_numbers = #tpu.dot_dimension_numbers<[1], [1], [0], [0], [0, 0, 1, 0], [], []>} : vector<128x16xf32>, vector<1x16xf32>, vector<128x1xf32> -> vector<128x1xf32>
    %cst_8 = arith.constant dense<0.000000e+00> : vector<1x128xf32>
    %6 = tpu.matmul %3, %4, %cst_8 {dimension_numbers = #tpu.dot_dimension_numbers<[1], [1], [0], [0], [0, 0, 1, 0], [], []>} : vector<1x16xf32>, vector<128x16xf32>, vector<1x128xf32> -> vector<1x128xf32>
    %7 = vector.broadcast %5 : vector<128x1xf32> to vector<128x128xf32>
    %8 = vector.broadcast %6 : vector<1x128xf32> to vector<128x128xf32>
    %9 = arith.addf %7, %8 : vector<128x128xf32>
    %c0_9 = arith.constant 0 : index
    %c0_10 = arith.constant 0 : index
    %c0_11 = arith.constant 0 : index
    %10 = vector.load %arg2[%c0_9, %c0_10, %c0_11] : memref<1x128x128xf32, #tpu.memory_space<vmem>>, vector<1x128x128xf32>
    %11 = vector.shape_cast %10 : vector<1x128x128xf32> to vector<128x128xf32>
    %12 = arith.mulf %9, %11 : vector<128x128xf32>
    %cst_12 = arith.constant 0.000000e+00 : f32
    %13 = vector.broadcast %cst_12 : f32 to vector<128x128xf32>
    %14 = arith.cmpf ogt, %12, %13 : vector<128x128xf32>
    %cst_13 = arith.constant 2.000000e-01 : f32
    %15 = vector.broadcast %cst_13 : f32 to vector<128x128xf32>
    %16 = arith.mulf %15, %12 : vector<128x128xf32>
    %17 = arith.select %14, %12, %16 : vector<128x128xi1>, vector<128x128xf32>
    %cst_14 = arith.constant dense<0xFF800000> : vector<128xf32>
    %18 = vector.multi_reduction <maximumf>, %17, %cst_14 [1] : vector<128x128xf32> to vector<128xf32>
    %19 = vector.shape_cast %18 : vector<128xf32> to vector<128x1xf32>
    %20 = vector.broadcast %19 : vector<128x1xf32> to vector<128x128xf32>
    %21 = arith.subf %17, %20 : vector<128x128xf32>
    %22 = math.exp %21 : vector<128x128xf32>
    %c0_15 = arith.constant 0 : index
    %c0_16 = arith.constant 0 : index
    %c0_17 = arith.constant 0 : index
    %23 = vector.load %arg1[%c0_15, %c0_16, %c0_17] : memref<1x128x128xbf16, #tpu.memory_space<vmem>>, vector<1x128x128xbf16>
    %24 = vector.shape_cast %23 : vector<1x128x128xbf16> to vector<128x128xbf16>
    %25 = arith.extf %24 : vector<128x128xbf16> to vector<128x128xf32>
    %26 = arith.mulf %22, %25 : vector<128x128xf32>
    %cst_18 = arith.constant dense<0.000000e+00> : vector<128xf32>
    %27 = vector.multi_reduction <add>, %26, %cst_18 [1] : vector<128x128xf32> to vector<128xf32>
    %28 = vector.shape_cast %27 : vector<128xf32> to vector<128x1xf32>
    %cst_19 = arith.constant 1.000000e-30 : f32
    %29 = vector.broadcast %cst_19 : f32 to vector<128x1xf32>
    %30 = arith.maximumf %28, %29 : vector<128x1xf32>
    %31 = tpu.reciprocal %30 : vector<128x1xf32> -> vector<128x1xf32>
    %32 = vector.broadcast %31 : vector<128x1xf32> to vector<128x128xf32>
    %33 = arith.mulf %26, %32 : vector<128x128xf32>
    %34 = arith.truncf %33 : vector<128x128xf32> to vector<128x128xbf16>
    %35 = arith.truncf %4 : vector<128x16xf32> to vector<128x16xbf16>
    %cst_20 = arith.constant dense<0.000000e+00> : vector<128x16xf32>
    %36 = tpu.matmul %34, %35, %cst_20 {dimension_numbers = #tpu.dot_dimension_numbers<[1], [0], [0], [1], [0, 0, 1, 1], [], []>} : vector<128x128xbf16>, vector<128x16xbf16>, vector<128x16xf32> -> vector<128x16xf32>
    %cst_21 = arith.constant 0.000000e+00 : f32
    %37 = vector.broadcast %cst_21 : f32 to vector<128x16xf32>
    %38 = arith.cmpf ogt, %36, %37 : vector<128x16xf32>
    %39 = math.exp %36 : vector<128x16xf32>
    %cst_22 = arith.constant 1.000000e+00 : f32
    %40 = vector.broadcast %cst_22 : f32 to vector<128x16xf32>
    %41 = arith.subf %39, %40 : vector<128x16xf32>
    %42 = arith.select %38, %36, %41 : vector<128x16xi1>, vector<128x16xf32>
    %c0_23 = arith.constant 0 : index
    %c0_24 = arith.constant 0 : index
    %43 = vector.load %arg7[%c0_23, %c0_24] : memref<16x8xf32, #tpu.memory_space<vmem>>, vector<16x8xf32>
    %c0_25 = arith.constant 0 : index
    %c0_26 = arith.constant 0 : index
    %44 = vector.load %arg8[%c0_25, %c0_26] : memref<1x8xf32, #tpu.memory_space<vmem>>, vector<1x8xf32>
    %c0_27 = arith.constant 0 : index
    %c0_28 = arith.constant 0 : index
    %45 = vector.load %arg9[%c0_27, %c0_28] : memref<1x8xf32, #tpu.memory_space<vmem>>, vector<1x8xf32>
    %cst_29 = arith.constant dense<0.000000e+00> : vector<128x8xf32>
    %46 = tpu.matmul %42, %43, %cst_29 {dimension_numbers = #tpu.dot_dimension_numbers<[1], [0], [0], [1], [0, 0, 1, 1], [], []>} : vector<128x16xf32>, vector<16x8xf32>, vector<128x8xf32> -> vector<128x8xf32>
    %cst_30 = arith.constant dense<0.000000e+00> : vector<128x1xf32>
    %47 = tpu.matmul %46, %44, %cst_30 {dimension_numbers = #tpu.dot_dimension_numbers<[1], [1], [0], [0], [0, 0, 1, 0], [], []>} : vector<128x8xf32>, vector<1x8xf32>, vector<128x1xf32> -> vector<128x1xf32>
    %cst_31 = arith.constant dense<0.000000e+00> : vector<1x128xf32>
    %48 = tpu.matmul %45, %46, %cst_31 {dimension_numbers = #tpu.dot_dimension_numbers<[1], [1], [0], [0], [0, 0, 1, 0], [], []>} : vector<1x8xf32>, vector<128x8xf32>, vector<1x128xf32> -> vector<1x128xf32>
    %49 = vector.broadcast %47 : vector<128x1xf32> to vector<128x128xf32>
    %50 = vector.broadcast %48 : vector<1x128xf32> to vector<128x128xf32>
    %51 = arith.addf %49, %50 : vector<128x128xf32>
    %c0_32 = arith.constant 0 : index
    %c0_33 = arith.constant 0 : index
    %c0_34 = arith.constant 0 : index
    %52 = vector.load %arg2[%c0_32, %c0_33, %c0_34] : memref<1x128x128xf32, #tpu.memory_space<vmem>>, vector<1x128x128xf32>
    %53 = vector.shape_cast %52 : vector<1x128x128xf32> to vector<128x128xf32>
    %54 = arith.mulf %51, %53 : vector<128x128xf32>
    %cst_35 = arith.constant 0.000000e+00 : f32
    %55 = vector.broadcast %cst_35 : f32 to vector<128x128xf32>
    %56 = arith.cmpf ogt, %54, %55 : vector<128x128xf32>
    %cst_36 = arith.constant 2.000000e-01 : f32
    %57 = vector.broadcast %cst_36 : f32 to vector<128x128xf32>
    %58 = arith.mulf %57, %54 : vector<128x128xf32>
    %59 = arith.select %56, %54, %58 : vector<128x128xi1>, vector<128x128xf32>
    %cst_37 = arith.constant dense<0xFF800000> : vector<128xf32>
    %60 = vector.multi_reduction <maximumf>, %59, %cst_37 [1] : vector<128x128xf32> to vector<128xf32>
    %61 = vector.shape_cast %60 : vector<128xf32> to vector<128x1xf32>
    %62 = vector.broadcast %61 : vector<128x1xf32> to vector<128x128xf32>
    %63 = arith.subf %59, %62 : vector<128x128xf32>
    %64 = math.exp %63 : vector<128x128xf32>
    %c0_38 = arith.constant 0 : index
    %c0_39 = arith.constant 0 : index
    %c0_40 = arith.constant 0 : index
    %65 = vector.load %arg1[%c0_38, %c0_39, %c0_40] : memref<1x128x128xbf16, #tpu.memory_space<vmem>>, vector<1x128x128xbf16>
    %66 = vector.shape_cast %65 : vector<1x128x128xbf16> to vector<128x128xbf16>
    %67 = arith.extf %66 : vector<128x128xbf16> to vector<128x128xf32>
    %68 = arith.mulf %64, %67 : vector<128x128xf32>
    %cst_41 = arith.constant dense<0.000000e+00> : vector<128xf32>
    %69 = vector.multi_reduction <add>, %68, %cst_41 [1] : vector<128x128xf32> to vector<128xf32>
    %70 = vector.shape_cast %69 : vector<128xf32> to vector<128x1xf32>
    %cst_42 = arith.constant 1.000000e-30 : f32
    %71 = vector.broadcast %cst_42 : f32 to vector<128x1xf32>
    %72 = arith.maximumf %70, %71 : vector<128x1xf32>
    %73 = tpu.reciprocal %72 : vector<128x1xf32> -> vector<128x1xf32>
    %74 = vector.broadcast %73 : vector<128x1xf32> to vector<128x128xf32>
    %75 = arith.mulf %68, %74 : vector<128x128xf32>
    %76 = arith.truncf %75 : vector<128x128xf32> to vector<128x128xbf16>
    %77 = arith.truncf %46 : vector<128x8xf32> to vector<128x8xbf16>
    %cst_43 = arith.constant dense<0.000000e+00> : vector<128x8xf32>
    %78 = tpu.matmul %76, %77, %cst_43 {dimension_numbers = #tpu.dot_dimension_numbers<[1], [0], [0], [1], [0, 0, 1, 1], [], []>} : vector<128x128xbf16>, vector<128x8xbf16>, vector<128x8xf32> -> vector<128x8xf32>
    %cst_44 = arith.constant 0.000000e+00 : f32
    %79 = vector.broadcast %cst_44 : f32 to vector<128x8xf32>
    %80 = arith.cmpf ogt, %78, %79 : vector<128x8xf32>
    %81 = math.exp %78 : vector<128x8xf32>
    %cst_45 = arith.constant 1.000000e+00 : f32
    %82 = vector.broadcast %cst_45 : f32 to vector<128x8xf32>
    %83 = arith.subf %81, %82 : vector<128x8xf32>
    %84 = arith.select %80, %78, %83 : vector<128x8xi1>, vector<128x8xf32>
    %85 = arith.mulf %84, %84 : vector<128x8xf32>
    %cst_46 = arith.constant dense<0.000000e+00> : vector<128xf32>
    %86 = vector.multi_reduction <add>, %85, %cst_46 [1] : vector<128x8xf32> to vector<128xf32>
    %87 = vector.shape_cast %86 : vector<128xf32> to vector<128x1xf32>
    %cst_47 = arith.constant 1.000000e-24 : f32
    %88 = vector.broadcast %cst_47 : f32 to vector<128x1xf32>
    %89 = arith.maximumf %87, %88 : vector<128x1xf32>
    %90 = math.rsqrt %89 : vector<128x1xf32>
    %91 = vector.broadcast %90 : vector<128x1xf32> to vector<128x8xf32>
    %92 = arith.mulf %84, %91 : vector<128x8xf32>
    %c0_48 = arith.constant 0 : index
    %c0_49 = arith.constant 0 : index
    %c0_50 = arith.constant 0 : index
    %93 = vector.load %arg11[%c0_48, %c0_49, %c0_50] : memref<1x128x8xf32, #tpu.memory_space<vmem>>, vector<1x128x8xf32>
    %94 = vector.shape_cast %93 : vector<1x128x8xf32> to vector<128x8xf32>
    %95 = vector.shape_cast %92 : vector<128x8xf32> to vector<1x128x8xf32>
    tpu.vector_store %arg11[%c0_48, %c0_49, %c0_50], %95 {strides = array<i32>} : memref<1x128x8xf32, #tpu.memory_space<vmem>>, vector<1x128x8xf32>,
    %96 = arith.truncf %92 : vector<128x8xf32> to vector<128x8xbf16>
    %cst_51 = arith.constant dense<0.000000e+00> : vector<128x128xf32>
    %97 = tpu.matmul %96, %96, %cst_51 {dimension_numbers = #tpu.dot_dimension_numbers<[1], [1], [0], [0], [0, 0, 1, 0], [], []>} : vector<128x8xbf16>, vector<128x8xbf16>, vector<128x128xf32> -> vector<128x128xf32>
    %c0_52 = arith.constant 0 : index
    %c0_53 = arith.constant 0 : index
    %c0_54 = arith.constant 0 : index
    %98 = vector.load %arg10[%c0_52, %c0_53, %c0_54] : memref<1x128x128xf32, #tpu.memory_space<vmem>>, vector<1x128x128xf32>
    %99 = vector.shape_cast %98 : vector<1x128x128xf32> to vector<128x128xf32>
    %100 = vector.shape_cast %97 : vector<128x128xf32> to vector<1x128x128xf32>
    tpu.vector_store %arg10[%c0_52, %c0_53, %c0_54], %100 {strides = array<i32>} : memref<1x128x128xf32, #tpu.memory_space<vmem>>, vector<1x128x128xf32>,
    return
  }
  func.func @transform_0(%arg0: i32) -> (i32, i32, i32) {
    %c0_i32 = arith.constant 0 : i32
    %c0_i32_0 = arith.constant 0 : i32
    %c0_i32_1 = arith.constant 0 : i32
    return %arg0, %c0_i32, %c0_i32_0 : i32, i32, i32
  }
  func.func @transform_1(%arg0: i32) -> (i32, i32, i32) {
    %c0_i32 = arith.constant 0 : i32
    %c0_i32_0 = arith.constant 0 : i32
    %c0_i32_1 = arith.constant 0 : i32
    return %arg0, %c0_i32, %c0_i32_0 : i32, i32, i32
  }
  func.func @transform_2(%arg0: i32) -> (i32, i32) {
    %c0_i32 = arith.constant 0 : i32
    %c0_i32_0 = arith.constant 0 : i32
    %c0_i32_1 = arith.constant 0 : i32
    return %c0_i32, %c0_i32_0 : i32, i32
  }
  func.func @transform_3(%arg0: i32) -> (i32, i32) {
    %c0_i32 = arith.constant 0 : i32
    %c0_i32_0 = arith.constant 0 : i32
    %c0_i32_1 = arith.constant 0 : i32
    return %c0_i32, %c0_i32_0 : i32, i32
  }
  func.func @transform_4(%arg0: i32) -> (i32, i32) {
    %c0_i32 = arith.constant 0 : i32
    %c0_i32_0 = arith.constant 0 : i32
    %c0_i32_1 = arith.constant 0 : i32
    return %c0_i32, %c0_i32_0 : i32, i32
  }
  func.func @transform_5(%arg0: i32) -> (i32, i32) {
    %c0_i32 = arith.constant 0 : i32
    %c0_i32_0 = arith.constant 0 : i32
    %c0_i32_1 = arith.constant 0 : i32
    return %c0_i32, %c0_i32_0 : i32, i32
  }
  func.func @transform_6(%arg0: i32) -> (i32, i32) {
    %c0_i32 = arith.constant 0 : i32
    %c0_i32_0 = arith.constant 0 : i32
    %c0_i32_1 = arith.constant 0 : i32
    return %c0_i32, %c0_i32_0 : i32, i32
  }
  func.func @transform_7(%arg0: i32) -> (i32, i32) {
    %c0_i32 = arith.constant 0 : i32
    %c0_i32_0 = arith.constant 0 : i32
    %c0_i32_1 = arith.constant 0 : i32
    return %c0_i32, %c0_i32_0 : i32, i32
  }
  func.func @transform_8(%arg0: i32) -> (i32, i32) {
    %c0_i32 = arith.constant 0 : i32
    %c0_i32_0 = arith.constant 0 : i32
    %c0_i32_1 = arith.constant 0 : i32
    return %c0_i32, %c0_i32_0 : i32, i32
  }
  func.func @transform_9(%arg0: i32) -> (i32, i32, i32) {
    %c0_i32 = arith.constant 0 : i32
    %c0_i32_0 = arith.constant 0 : i32
    %c0_i32_1 = arith.constant 0 : i32
    return %arg0, %c0_i32, %c0_i32_0 : i32, i32, i32
  }
  func.func @transform_10(%arg0: i32) -> (i32, i32, i32) {
    %c0_i32 = arith.constant 0 : i32
    %c0_i32_0 = arith.constant 0 : i32
    %c0_i32_1 = arith.constant 0 : i32
    return %arg0, %c0_i32, %c0_i32_0 : i32, i32, i32
  }
}

</mosaic_0001>

<bundles_post_ra>
// kernel: gat_forward.3
= control target key start
LH: loop header
LB: loop body
LE: loop exit
PB: predicated region body
PF: predicated region fallthrough
CT: control target
= control target key end

     0   :  { %s465_s16 = smov 8   ;;  %s789_s0 = inlined_call_operand.vmem [shape: f32[2,128,128], index: 0, kind: input, shape index: {}]   ;;  %s790_s1 = inlined_call_operand.vmem [shape: f32[2,128,8], index: 1, kind: input, shape index: {}]   ;;  %s791_s2 = inlined_call_operand.hbm [shape: f32[128,128], index: 2, kind: output, shape index: {0}]   ;;  %s792_s3 = inlined_call_operand.vmem [shape: f32[128,16], index: 3, kind: output, shape index: {1}]  }
   0x1   :  { %v360_v0 = vld [vmem:[%s790_s1 + $0x90] sm:$0xff]  ;;  %v358_v1 = vld [vmem:[%s790_s1 + $0x80] sm:$0xff]  ;;  %v361_v2 = vld [vmem:[%s790_s1 + $0x98] sm:$0xff] }
   0x2   :  { %228 = vrot.lane.b32.xlu1 %v360_v0, %s465_s16  ;;  %224 = vrot.lane.b32.xlu0 %v358_v1, %s465_s16  ;;  %v359_v3 = vld [vmem:[%s790_s1 + $0x88] sm:$0xff]  ;;  %v362_v5 = vld [vmem:[%s790_s1 + $0xa0] sm:$0xff] }
   0x3   :  { %v363_v4 = vld [vmem:[%s790_s1 + $0xa8] sm:$0xff]  ;;  %v365_v6 = vld [vmem:[%s790_s1 + $0xb8] sm:$0xff]  ;;  %v364_v7 = vld [vmem:[%s790_s1 + $0xb0] sm:$0xff] }
   0x6   :  { %230 = vrot.lane.b32.xlu1 %v361_v2, %s465_s16  ;;  %226 = vrot.lane.b32.xlu0 %v359_v3, %s465_s16 }
   0xa   :  { %234 = vrot.lane.b32.xlu1 %v363_v4, %s465_s16  ;;  %232 = vrot.lane.b32.xlu0 %v362_v5, %s465_s16 }
   0xb   :  { %9 = vsyncpa [#allocation3], 0  ;;  %v367_v8 = vld [vmem:[%s790_s1 + $0xc8] sm:$0xff]  ;;  %v366_v9 = vld [vmem:[%s790_s1 + $0xc0] sm:$0xff] }
   0xc   :  { %v14_v10 = vld [vmem:[%s789_s0] sm:$0xff]  ;;  %v15_v11 = vld [vmem:[%s789_s0 + $0x8] sm:$0xff]  ;;  %v369_v12 = vld [vmem:[%s790_s1 + $0xd8] sm:$0xff] }
   0xd   :  { %v368_v13 = vld [vmem:[%s790_s1 + $0xd0] sm:$0xff]  ;;  %v17_v15 = vld [vmem:[%s789_s0 + $0x18] sm:$0xff]  ;;  %v18_v16 = vld [vmem:[%s789_s0 + $0x20] sm:$0xff] }
   0xe   :  { %238 = vrot.lane.b32.xlu1 %v365_v6, %s465_s16  ;;  %236 = vrot.lane.b32.xlu0 %v364_v7, %s465_s16  ;;  %v16_v14 = vld [vmem:[%s789_s0 + $0x10] sm:$0xff]  ;;  %v19_v17 = vld [vmem:[%s789_s0 + $0x28] sm:$0xff] }
   0xf   :  { %v20_v18 = vld [vmem:[%s789_s0 + $0x30] sm:$0xff]  ;;  %v326_v19 = vld [vmem:[%s789_s0 + $0x80] sm:$0xff]  ;;  %v327_v20 = vld [vmem:[%s789_s0 + $0x88] sm:$0xff] }
  0x10   :  { %v328_v21 = vld [vmem:[%s789_s0 + $0x90] sm:$0xff]  ;;  %v329_v22 = vld [vmem:[%s789_s0 + $0x98] sm:$0xff]  ;;  %v330_v23 = vld [vmem:[%s789_s0 + $0xa0] sm:$0xff]  ;;  %v47_v25 = vadd.f32 %v326_v19, %v14_v10  ;;  %v48_v26 = vadd.f32 %v327_v20, %v15_v11 }
  0x11   :  { %v331_v24 = vld [vmem:[%s789_s0 + $0xa8] sm:$0xff]  ;;  %v21_v28 = vld [vmem:[%s789_s0 + $0x38] sm:$0xff]  ;;  %v332_v29 = vld [vmem:[%s789_s0 + $0xb0] sm:$0xff]  ;;  %v49_v31 = vadd.f32 %v328_v21, %v16_v14  ;;  %v50_v34 = vadd.f32 %v329_v22, %v17_v15  ;;  %v51_v35 = vadd.f32 %v330_v23, %v18_v16 }
  0x12   :  { %242 = vrot.lane.b32.xlu1 %v367_v8, %s465_s16  ;;  %240 = vrot.lane.b32.xlu0 %v366_v9, %s465_s16  ;;  %v371_v27 = vld [vmem:[%s790_s1 + $0xe8] sm:$0xff]  ;;  %v333_v30 = vld [vmem:[%s789_s0 + $0xb8] sm:$0xff]  ;;  %v52_v36 = vadd.f32 %v331_v24, %v19_v17  ;;  %v342_v37 = vmul.f32 -1.442695, %v47_v25  ;;  %v53_v41 = vadd.f32 %v332_v29, %v20_v18  ;;  %v343_v42 = vmul.f32 -1.442695, %v48_v26 }
  0x13   :  { %v22_v32 = vld [vmem:[%s789_s0 + $0x40] sm:$0xff]  ;;  %v23_v39 = vld [vmem:[%s789_s0 + $0x48] sm:$0xff]  ;;  %v24_v43 = vld [vmem:[%s789_s0 + $0x50] sm:$0xff]  ;;  %v54_v46 = vadd.f32 %v333_v30, %v21_v28  ;;  %v344_v52 = vmul.f32 -1.442695, %v49_v31 }
  0x14   :  { %v334_v33 = vld [vmem:[%s789_s0 + $0xc0] sm:$0xff]  ;;  %v335_v40 = vld [vmem:[%s789_s0 + $0xc8] sm:$0xff]  ;;  %v25_v44 = vld [vmem:[%s789_s0 + $0x58] sm:$0xff]  ;;  %377 = vpow2.f32 %v342_v37  ;;  %v345_v54 = vmul.f32 -1.442695, %v50_v34 }
  0x15   :  { %v370_v38 = vld [vmem:[%s790_s1 + $0xe0] sm:$0xff]  ;;  %v336_v45 = vld [vmem:[%s789_s0 + $0xd0] sm:$0xff]  ;;  %v373_v47 = vld [vmem:[%s790_s1 + $0xf8] sm:$0xff]  ;;  %v55_v51 = vadd.f32 %v334_v33, %v22_v32  ;;  %379 = vpow2.f32 %v343_v42  ;;  %v56_v53 = vadd.f32 %v335_v40, %v23_v39  ;;  %v346_v55 = vmul.f32 -1.442695, %v51_v35 }
  0x16   :  { %246 = vrot.lane.b32.xlu1 %v369_v12, %s465_s16  ;;  %244 = vrot.lane.b32.xlu0 %v368_v13, %s465_s16  ;;  %v26_v48 = vld [vmem:[%s789_s0 + $0x60] sm:$0xff]  ;;  %v337_v49 = vld [vmem:[%s789_s0 + $0xd8] sm:$0xff]  ;;  %v347_v56 = vmul.f32 -1.442695, %v52_v36  ;;  %v57_v60 = vadd.f32 %v336_v45, %v24_v43  ;;  %381 = vpow2.f32 %v344_v52  ;;  %v348_v61 = vmul.f32 -1.442695, %v53_v41 }
  0x17   :  { %v338_v50 = vld [vmem:[%s789_s0 + $0xe0] sm:$0xff]  ;;  %v372_v57 = vld [vmem:[%s790_s1 + $0xf0] sm:$0xff]  ;;  %v27_v58 = vld [vmem:[%s789_s0 + $0x68] sm:$0xff]  ;;  %v58_v0 = vadd.f32 %v337_v49, %v25_v44  ;;  %383 = vpow2.f32 %v345_v54  ;;  %v349_v1 = vmul.f32 -1.442695, %v54_v46 }
  0x18   :  { %v339_v59 = vld [vmem:[%s789_s0 + $0xe8] sm:$0xff]  ;;  %v28_v62 = vld [vmem:[%s789_s0 + $0x70] sm:$0xff]  ;;  %v29_v2 = vld [vmem:[%s789_s0 + $0x78] sm:$0xff]  ;;  %v59_v4 = vadd.f32 %v338_v50, %v26_v48  ;;  %385 = vpow2.f32 %v346_v55  ;;  %v350_v5 = vmul.f32 -1.442695, %v55_v51 }
  0x19   :  { %v340_v63 = vld [vmem:[%s789_s0 + $0xf0] sm:$0xff]  ;;  %v341_v3 = vld [vmem:[%s789_s0 + $0xf8] sm:$0xff]  ;;  %v60_v6 = vadd.f32 %v339_v59, %v27_v58  ;;  %387 = vpow2.f32 %v347_v56  ;;  %v351_v7 = vmul.f32 -1.442695, %v56_v53  ;;  %v352_v9 = vmul.f32 -1.442695, %v57_v60 }
  0x1a   :  { %250 = vrot.lane.b32.xlu1 %v371_v27, %s465_s16  ;;  %248 = vrot.lane.b32.xlu0 %v370_v38, %s465_s16  ;;  %v61_v8 = vadd.f32 %v340_v63, %v28_v62  ;;  %389 = vpow2.f32 %v348_v61  ;;  %v62_v10 = vadd.f32 %v341_v3, %v29_v2  ;;  %v353_v11 = vmul.f32 -1.442695, %v58_v0  ;;  %s466_s0 = smov [#allocation2]  }
  0x1b   :  { %391 = vpow2.f32 %v349_v1  ;;  %v354_v12 = vmul.f32 -1.442695, %v59_v4  ;;  %v355_v14 = vmul.f32 -1.442695, %v60_v6  ;;  %s311_s4 = sshll.u32 %s466_s0, 4  ;;  %s312_s4 = int_to_ptr.vmem [resolvable:$true] %s311_s4 }
  0x1c   :  { %393 = vpow2.f32 %v350_v5  ;;  %v356_v16 = vmul.f32 -1.442695, %v61_v8  ;;  %v357_v17 = vmul.f32 -1.442695, %v62_v10  ;;  %s441_s5 = scalar_lea.vmem %s312_s4, 2048  ;;  %p446_p1 = scmp.lt.s32.totalorder %s312_s4, %s312_s4 }
  0x1d   :  { %395 = vpow2.f32 %v351_v7  ;;  %p442_p0 = scmp.ne.s32.totalorder %s312_s4, %s441_s5  ;;  %p447_p2 = scmp.lt.s32.totalorder %s441_s5, %s441_s5 }
  0x1e   :  { %254 = vrot.lane.b32.xlu1 %v373_v47, %s465_s16  ;;  %252 = vrot.lane.b32.xlu0 %v372_v57, %s465_s16  ;;  %v378_v13 = vpop.eup %377  ;;  %397 = vpow2.f32 %v352_v9 }
  0x1f   :  { %v380_v15 = vpop.eup %379  ;;  %399 = vpow2.f32 %v353_v11  ;;  %v111_v19 = vadd.f32 1.0, %v378_v13  ;;  %p448_p3 = por %p447_p2, %p446_p1 }
  0x20   :  { %v382_v18 = vpop.eup %381  ;;  %401 = vpow2.f32 %v354_v12  ;;  %v112_v21 = vadd.f32 1.0, %v380_v15 }
  0x21   :  { %v384_v20 = vpop.eup %383  ;;  %403 = vpow2.f32 %v355_v14  ;;  %v113_v23 = vadd.f32 1.0, %v382_v18  ;;  %p449_p4 = pnand %p448_p3, %p442_p0 }
  0x22   :  { %v386_v22 = vpop.eup %385  ;;  %405 = vpow2.f32 %v356_v16  ;;  %v114_v25 = vadd.f32 1.0, %v384_v20 }
  0x23   :  { %v388_v24 = vpop.eup %387  ;;  %407 = vpow2.f32 %v357_v17  ;;  %v115_v27 = vadd.f32 1.0, %v386_v22 }
  0x24   :  { %v390_v26 = vpop.eup %389  ;;  %409 = vrcp.f32 %v111_v19  ;;  %v116_v29 = vadd.f32 1.0, %v388_v24 }
  0x25   :  { %v392_v28 = vpop.eup %391  ;;  %411 = vrcp.f32 %v112_v21  ;;  %v117_v31 = vadd.f32 1.0, %v390_v26 }
  0x26   :  { %v394_v30 = vpop.eup %393  ;;  %413 = vrcp.f32 %v113_v23  ;;  %v118_v33 = vadd.f32 1.0, %v392_v28 }
  0x27   :  { %v396_v32 = vpop.eup %395  ;;  %415 = vrcp.f32 %v114_v25  ;;  %v119_v35 = vadd.f32 1.0, %v394_v30 }
  0x28   :  { %v398_v34 = vpop.eup %397  ;;  %417 = vrcp.f32 %v115_v27  ;;  %v120_v37 = vadd.f32 1.0, %v396_v32 }
  0x29   :  { %v400_v36 = vpop.eup %399  ;;  %419 = vrcp.f32 %v116_v29  ;;  %v121_v39 = vadd.f32 1.0, %v398_v34 }
  0x2a   :  { %v402_v38 = vpop.eup %401  ;;  %421 = vrcp.f32 %v117_v31  ;;  %v122_v41 = vadd.f32 1.0, %v400_v36 }
  0x2b   :  { %v404_v40 = vpop.eup %403  ;;  %423 = vrcp.f32 %v118_v33  ;;  %v123_v43 = vadd.f32 1.0, %v402_v38 }
  0x2c   :  { %v406_v42 = vpop.eup %405  ;;  %425 = vrcp.f32 %v119_v35  ;;  %v124_v45 = vadd.f32 1.0, %v404_v40 }
  0x2d   :  { %v408_v44 = vpop.eup %407  ;;  %427 = vrcp.f32 %v120_v37  ;;  %v125_v47 = vadd.f32 1.0, %v406_v42 }
  0x2e   :  { %v410_v46 = vpop.eup %409  ;;  %429 = vrcp.f32 %v121_v39  ;;  %v126_v49 = vadd.f32 1.0, %v408_v44 }
  0x2f   :  { %v412_v48 = vpop.eup %411  ;;  %431 = vrcp.f32 %v122_v41  ;;  %159 = vst [vmem:[#allocation2] sm:$0xff] %v410_v46 }
  0x30   :  { %v414_v50 = vpop.eup %413  ;;  %433 = vrcp.f32 %v123_v43  ;;  %160 = vst [vmem:[#allocation2 + $0x8] sm:$0xff] %v412_v48 }
  0x31   :  { %v416_v51 = vpop.eup %415  ;;  %435 = vrcp.f32 %v124_v45  ;;  %161 = vst [vmem:[#allocation2 + $0x10] sm:$0xff] %v414_v50 }
  0x32   :  { %v418_v52 = vpop.eup %417  ;;  %437 = vrcp.f32 %v125_v47  ;;  %162 = vst [vmem:[#allocation2 + $0x18] sm:$0xff] %v416_v51 }
  0x33   :  { %v420_v53 = vpop.eup %419  ;;  %439 = vrcp.f32 %v126_v49  ;;  %163 = vst [vmem:[#allocation2 + $0x20] sm:$0xff] %v418_v52 }
  0x34   :  { %v422_v54 = vpop.eup %421  ;;  %164 = vst [vmem:[#allocation2 + $0x28] sm:$0xff] %v420_v53 }
  0x35   :  { %v424_v55 = vpop.eup %423  ;;  %165 = vst [vmem:[#allocation2 + $0x30] sm:$0xff] %v422_v54 }
  0x36   :  { %v426_v56 = vpop.eup %425  ;;  %166 = vst [vmem:[#allocation2 + $0x38] sm:$0xff] %v424_v55 }
  0x37   :  { %v428_v57 = vpop.eup %427  ;;  %167 = vst [vmem:[#allocation2 + $0x40] sm:$0xff] %v426_v56 }
  0x38   :  { %v430_v58 = vpop.eup %429  ;;  %168 = vst [vmem:[#allocation2 + $0x48] sm:$0xff] %v428_v57 }
  0x39   :  { %v432_v59 = vpop.eup %431  ;;  %169 = vst [vmem:[#allocation2 + $0x50] sm:$0xff] %v430_v58 }
  0x3a   :  { %v434_v60 = vpop.eup %433  ;;  %170 = vst [vmem:[#allocation2 + $0x58] sm:$0xff] %v432_v59 }
  0x3b   :  { %v436_v61 = vpop.eup %435  ;;  %171 = vst [vmem:[#allocation2 + $0x60] sm:$0xff] %v434_v60 }
  0x3c   :  { %v438_v62 = vpop.eup %437  ;;  %172 = vst [vmem:[#allocation2 + $0x68] sm:$0xff] %v436_v61 }
  0x3d   :  { %v440_v63 = vpop.eup %439  ;;  %173 = vst [vmem:[#allocation2 + $0x70] sm:$0xff] %v438_v62 }
  0x3e   :  { %174 = vst [vmem:[#allocation2 + $0x78] sm:$0xff] %v440_v63 }
  0x3f   :  { %452 = shalt.err (!%p449_p4)
}
  0x40   :  { %s453_s8 = scalar_lea.hbm %s791_s2, 2048 }
  0x41   :  { %p454_p5 = scmp.ne.s32.totalorder %s791_s2, %s453_s8  ;;  %p457_p6 = scmp.lt.u32.totalorder %s453_s8, %s791_s2 }
  0x43   :  { %p459_p7 = pnand %p457_p6, %p454_p5 }
  0x45   :  { %462 = shalt.err (!%p459_p7)
}
  0x46   :  { %s467_s13 = smov 128   ;;  %vm272_vm0 = vcmask 64512   ;;  %v177_v0 = vld [vmem:[%s790_s1 + $0x10] sm:$0xff]  ;;  %v175_v1 = vld [vmem:[%s790_s1] sm:$0xff]  ;;  %vm289_vm1 = vcmask 130048   ;;  %v178_v6 = vld [vmem:[%s790_s1 + $0x18] sm:$0xff] }
  0x47   :  { %317 = dma.vmem_to_hbm [thread:$0]  %s312_s4, 2048, %s791_s2, [#allocation3], %s467_s13, %s467_s13, %s465_s16  }
  0x48   :  { %v176_v7 = vld [vmem:[%s790_s1 + $0x8] sm:$0xff]  ;;  %v179_v13 = vld [vmem:[%s790_s1 + $0x20] sm:$0xff]  ;;  %v182_v18 = vld [vmem:[%s790_s1 + $0x38] sm:$0xff] }
  0x49   :  { %v180_v12 = vld [vmem:[%s790_s1 + $0x28] sm:$0xff]  ;;  %v181_v19 = vld [vmem:[%s790_s1 + $0x30] sm:$0xff]  ;;  %v183_v25 = vld [vmem:[%s790_s1 + $0x40] sm:$0xff] }
  0x4a   :  { %v184_v24 = vld [vmem:[%s790_s1 + $0x48] sm:$0xff]  ;;  %v186_v30 = vld [vmem:[%s790_s1 + $0x58] sm:$0xff]  ;;  %v185_v31 = vld [vmem:[%s790_s1 + $0x50] sm:$0xff] }
  0x4b   :  { %v188_v36 = vld [vmem:[%s790_s1 + $0x68] sm:$0xff]  ;;  %v187_v37 = vld [vmem:[%s790_s1 + $0x60] sm:$0xff]  ;;  %v190_v42 = vld [vmem:[%s790_s1 + $0x78] sm:$0xff] }
  0x4c   :  { %v189_v43 = vld [vmem:[%s790_s1 + $0x70] sm:$0xff] }
  0x74   :  { %v229_v2 = vpop.permute.xlu1 %228  ;;  %v225_v3 = vpop.permute.xlu0 %224 }
  0x75   :  { %v275_v4 = vsel %vm272_vm0, %v177_v0, %v229_v2  ;;  %v273_v5 = vsel %vm272_vm0, %v175_v1, %v225_v3 }
  0x76   :  { %292 = vst.msk [vmem:[%s792_s3 + $0x10] sm:$0xff] %vm289_vm1, %v275_v4  ;;  %290 = vst.msk [vmem:[%s792_s3] sm:$0xff] %vm289_vm1, %v273_v5 }
  0x78   :  { %v231_v8 = vpop.permute.xlu1 %230  ;;  %v227_v9 = vpop.permute.xlu0 %226 }
  0x79   :  { %v276_v10 = vsel %vm272_vm0, %v178_v6, %v231_v8  ;;  %v274_v11 = vsel %vm272_vm0, %v176_v7, %v227_v9 }
  0x7a   :  { %293 = vst.msk [vmem:[%s792_s3 + $0x18] sm:$0xff] %vm289_vm1, %v276_v10  ;;  %291 = vst.msk [vmem:[%s792_s3 + $0x8] sm:$0xff] %vm289_vm1, %v274_v11 }
  0x7c   :  { %v235_v14 = vpop.permute.xlu1 %234  ;;  %v233_v15 = vpop.permute.xlu0 %232 }
  0x7d   :  { %v278_v16 = vsel %vm272_vm0, %v180_v12, %v235_v14  ;;  %v277_v17 = vsel %vm272_vm0, %v179_v13, %v233_v15 }
  0x7e   :  { %295 = vst.msk [vmem:[%s792_s3 + $0x28] sm:$0xff] %vm289_vm1, %v278_v16  ;;  %294 = vst.msk [vmem:[%s792_s3 + $0x20] sm:$0xff] %vm289_vm1, %v277_v17 }
  0x80   :  { %v239_v20 = vpop.permute.xlu1 %238  ;;  %v237_v21 = vpop.permute.xlu0 %236 }
  0x81   :  { %v280_v22 = vsel %vm272_vm0, %v182_v18, %v239_v20  ;;  %v279_v23 = vsel %vm272_vm0, %v181_v19, %v237_v21 }
  0x82   :  { %297 = vst.msk [vmem:[%s792_s3 + $0x38] sm:$0xff] %vm289_vm1, %v280_v22  ;;  %296 = vst.msk [vmem:[%s792_s3 + $0x30] sm:$0xff] %vm289_vm1, %v279_v23 }
  0x84   :  { %v243_v26 = vpop.permute.xlu1 %242  ;;  %v241_v27 = vpop.permute.xlu0 %240 }
  0x85   :  { %v282_v28 = vsel %vm272_vm0, %v184_v24, %v243_v26  ;;  %v281_v29 = vsel %vm272_vm0, %v183_v25, %v241_v27 }
  0x86   :  { %299 = vst.msk [vmem:[%s792_s3 + $0x48] sm:$0xff] %vm289_vm1, %v282_v28  ;;  %298 = vst.msk [vmem:[%s792_s3 + $0x40] sm:$0xff] %vm289_vm1, %v281_v29 }
  0x88   :  { %v247_v32 = vpop.permute.xlu1 %246  ;;  %v245_v33 = vpop.permute.xlu0 %244 }
  0x89   :  { %v284_v34 = vsel %vm272_vm0, %v186_v30, %v247_v32  ;;  %v283_v35 = vsel %vm272_vm0, %v185_v31, %v245_v33 }
  0x8a   :  { %301 = vst.msk [vmem:[%s792_s3 + $0x58] sm:$0xff] %vm289_vm1, %v284_v34  ;;  %300 = vst.msk [vmem:[%s792_s3 + $0x50] sm:$0xff] %vm289_vm1, %v283_v35 }
  0x8c   :  { %v251_v38 = vpop.permute.xlu1 %250  ;;  %v249_v39 = vpop.permute.xlu0 %248 }
  0x8d   :  { %v286_v40 = vsel %vm272_vm0, %v188_v36, %v251_v38  ;;  %v285_v41 = vsel %vm272_vm0, %v187_v37, %v249_v39 }
  0x8e   :  { %303 = vst.msk [vmem:[%s792_s3 + $0x68] sm:$0xff] %vm289_vm1, %v286_v40  ;;  %302 = vst.msk [vmem:[%s792_s3 + $0x60] sm:$0xff] %vm289_vm1, %v285_v41 }
  0x90   :  { %v255_v44 = vpop.permute.xlu1 %254  ;;  %v253_v45 = vpop.permute.xlu0 %252 }
  0x91   :  { %v288_v46 = vsel %vm272_vm0, %v190_v42, %v255_v44  ;;  %v287_v47 = vsel %vm272_vm0, %v189_v43, %v253_v45 }
  0x92   :  { %305 = vst.msk [vmem:[%s792_s3 + $0x78] sm:$0xff] %vm289_vm1, %v288_v46  ;;  %304 = vst.msk [vmem:[%s792_s3 + $0x70] sm:$0xff] %vm289_vm1, %v287_v47 }
  0x93   :  { %463 = dma.done.wait [#allocation3], 2048  }
  0x94   :  { %464 = vsyncadd [#allocation3], 4294965248 }
  0x95   :  { %325 = vsyncpa [#allocation3], 1 }

// kernel: gat_forward.2
= control target key start
LH: loop header
LB: loop body
LE: loop exit
PB: predicated region body
PF: predicated region fallthrough
CT: control target
= control target key end

     0   :  { %s3431_s13 = smov 0   ;;  %s4417_s0 = inlined_call_operand.vmem [shape: bf16[2,128,128], index: 0, kind: input, shape index: {}]   ;;  %s4418_s1 = inlined_call_operand.vmem [shape: f32[2,128,128], index: 1, kind: input, shape index: {}]   ;;  %s4419_s2 = inlined_call_operand.vmem [shape: f32[128,32], index: 2, kind: input, shape index: {}]   ;;  %s4420_s3 = inlined_call_operand.vmem [shape: f32[32,16], index: 3, kind: input, shape index: {}]   ;;  %s4421_s4 = inlined_call_operand.vmem [shape: f32[1,16], index: 4, kind: input, shape index: {}]   ;;  %s4422_s5 = inlined_call_operand.vmem [shape: f32[1,16], index: 5, kind: input, shape index: {}]   ;;  %s4423_s6 = inlined_call_operand.vmem [shape: f32[16,8], index: 6, kind: input, shape index: {}]   ;;  %s4424_s7 = inlined_call_operand.vmem [shape: f32[1,8], index: 7, kind: input, shape index: {}]   ;;  %s4425_s8 = inlined_call_operand.vmem [shape: f32[1,8], index: 8, kind: input, shape index: {}]   ;;  %s4426_s9 = inlined_call_operand.vmem [shape: f32[2,128,128], index: 9, kind: output, shape index: {0}]   ;;  %s4427_s10 = inlined_call_operand.vmem [shape: f32[2,128,8], index: 10, kind: output, shape index: {1}]  }
   0x1 LB: > { %s2518_s14 = sadd.s32 4294967295, %s3371_s13   ;;  %p2522_p0 = scmp.ge.s32.totalorder %s3371_s13, 1  ;;  %s3371_s13 = sphi %s3431_s13, %s21_s13  }
   0x2   : > { %p325_p1 = scmp.lt.s32.totalorder %s3371_s13, 3 }
   0x4   : > { %p326_p2 = pnand %p2522_p0, %p325_p1 }
   0x5   : > { %v410_v0 = vld [vmem:[%s4420_s3] sm:$0xff] (!%p326_p2)  ;;  %v411_v1 = vld [vmem:[%s4420_s3 + $0x8] sm:$0xff] (!%p326_p2)  ;;  %v412_v2 = vld [vmem:[%s4420_s3 + $0x10] sm:$0xff] (!%p326_p2)  ;;  %vm416_vm0 = vcmask (!%p326_p2), 261120   ;;  %v3373_v22 = vmov (!%p326_p2), 0.0|0.0   ;;  %vm3374_vm1 = vmmov (!%p326_p2), 0  }
   0x6   : > { %329 = sbr.rel (%p326_p2) target bundleno = 2588 (0xa1c), region = 56  ;;  %v3030_v3 = vpack.c.bf16 (!%p326_p2), %v411_v1, %v410_v0  ;;  %v413_v4 = vld [vmem:[%s4420_s3 + $0x18] sm:$0xff] (!%p326_p2)  ;;  %v394_v5 = vld [vmem:[%s4419_s2] sm:$0xff] (!%p326_p2)  ;;  %v395_v7 = vld [vmem:[%s4419_s2 + $0x8] sm:$0xff] (!%p326_p2)  ;;  %3038 = vmatprep.subr.bf16.mxu1 (!%p326_p2), %v3373_v22  ;;  %v3375_v23 = vmov (!%p326_p2), 0.0   ;;  %vm632_vm2 = vcmask (!%p326_p2), 130048  }
   0x7   : > { %v3034_v6 = vpack.c.bf16 (!%p326_p2), %v413_v4, %v412_v2  ;;  %2812 = vmatprep.mubr.msk.f32.mxu0 (!%p326_p2), %vm416_vm0, %v394_v5  ;;  %v396_v8 = vld [vmem:[%s4419_s2 + $0x10] sm:$0xff] (!%p326_p2)  ;;  %v397_v9 = vld [vmem:[%s4419_s2 + $0x18] sm:$0xff] (!%p326_p2)  ;;  %v398_v10 = vld [vmem:[%s4419_s2 + $0x20] sm:$0xff] (!%p326_p2)  ;;  %2868 = vmatprep.mubr.msk.f32.mxu1 (!%p326_p2), %vm3374_vm1, %v3375_v23  ;;  %p373_p3 = scmp.lt.s32.totalorder (!%p326_p2), %s2518_s14, 1 }
   0x8   : > { %3031 = vmatprep.subr.bf16.mxu0 (!%p326_p2), %v3030_v3  ;;  %v399_v11 = vld [vmem:[%s4419_s2 + $0x28] sm:$0xff] (!%p326_p2)  ;;  %v400_v12 = vld [vmem:[%s4419_s2 + $0x30] sm:$0xff] (!%p326_p2)  ;;  %v401_v13 = vld [vmem:[%s4419_s2 + $0x38] sm:$0xff] (!%p326_p2) }
   0x9   : > { %3033 = vmatpush3.bf16.msra.mxu0 (!%p326_p2), %v3030_v3  ;;  %v402_v14 = vld [vmem:[%s4419_s2 + $0x40] sm:$0xff] (!%p326_p2)  ;;  %v403_v15 = vld [vmem:[%s4419_s2 + $0x48] sm:$0xff] (!%p326_p2)  ;;  %v404_v16 = vld [vmem:[%s4419_s2 + $0x50] sm:$0xff] (!%p326_p2) }
   0xa   : > { %3035 = vmatprep.subr.bf16.mxu0 (!%p326_p2), %v3034_v6  ;;  %v405_v17 = vld [vmem:[%s4419_s2 + $0x58] sm:$0xff] (!%p326_p2)  ;;  %v406_v18 = vld [vmem:[%s4419_s2 + $0x60] sm:$0xff] (!%p326_p2)  ;;  %v407_v19 = vld [vmem:[%s4419_s2 + $0x68] sm:$0xff] (!%p326_p2) }
   0xb   : > { %v408_v20 = vld [vmem:[%s4419_s2 + $0x70] sm:$0xff] (!%p326_p2)  ;;  %v409_v21 = vld [vmem:[%s4419_s2 + $0x78] sm:$0xff] (!%p326_p2)  ;;  %v3521_v24 = vld [vmem:[%s4421_s4] ss:$0 sm:$0xff] (!%p326_p2) }
   0xc   : > { %vm3525_vm3 = vmpackc.low (!%p326_p2), %vm632_vm2, %vm632_vm2 }
   0xd   : > { %3037 = vmatpush3.bf16.msra.mxu0 %v3034_v6  ;;  %s4433_s14 = smov (!%p373_p3, %s2518_s14), 1 }
   0xe   : > { %s3598_s23 = sshll.u32 %s4433_s14, 7  ;;  %s2641_s27 = sshll.u32 %s4433_s14, 6 }
   0xf   : > { %s3605_s26 = scalar_lea.vmem %s4418_s1, %s3598_s23  ;;  %s3699_s30 = scalar_lea.vmem %s4417_s0, %s2641_s27 }
  0x10   : > { %2813 = vmatmul.mubr.msk.f32.vlgmr.msra.gmra.mrb[0].mxu0 %vm416_vm0, %v395_v7  ;;  %s4313_s22 = scalar_lea.vmem %s4427_s10, %s3598_s23 }
  0x11   : > { %2815 = vmatprep.mubr.msk.f32.mxu0 %vm416_vm0, %v396_v8 }
  0x14   : > { %2816 = vmatmul.mubr.msk.f32.gmra.mrb[2].mxu0 %vm416_vm0, %v397_v9 }
  0x15   : > { %2818 = vmatprep.mubr.msk.f32.mxu0 %vm416_vm0, %v398_v10 }
  0x18   : > { %2819 = vmatmul.mubr.msk.f32.gmra.mrb[4].mxu0 %vm416_vm0, %v399_v11 }
  0x19   : > { %2821 = vmatprep.mubr.msk.f32.mxu0 %vm416_vm0, %v400_v12 }
  0x1c   : > { %2822 = vmatmul.mubr.msk.f32.gmra.mrb[6].mxu0 %vm416_vm0, %v401_v13 }
  0x1d   : > { %2824 = vmatprep.mubr.msk.f32.mxu0 %vm416_vm0, %v402_v14 }
  0x20   : > { %2825 = vmatmul.mubr.msk.f32.gmra.mrb[8].mxu0 %vm416_vm0, %v403_v15 }
  0x21   : > { %2827 = vmatprep.mubr.msk.f32.mxu0 %vm416_vm0, %v404_v16 }
  0x24   : > { %2828 = vmatmul.mubr.msk.f32.gmra.mrb[10].mxu0 %vm416_vm0, %v405_v17 }
  0x25   : > { %2830 = vmatprep.mubr.msk.f32.mxu0 %vm416_vm0, %v406_v18  ;;  %v415_v18 = vld [vmem:[%s4422_s5] sm:$0x1] }
  0x28   : > { %2831 = vmatmul.mubr.msk.f32.gmra.mrb[12].mxu0 %vm416_vm0, %v407_v19  ;;  %v802_v19 = vlaneseq }
  0x29   : > { %2833 = vmatprep.mubr.msk.f32.mxu0 %vm416_vm0, %v408_v20 }
  0x2c   : > { %2834 = vmatmul.mubr.msk.f32.gmra.mrb[14].mxu0 %vm416_vm0, %v409_v21 }
  0xe3   : > { %v2814_v25 = vpop.f32.mrb[0].mxu0 }
  0xe4   : > { %v531_v26 = vpop.f32.mrb[1].mxu0  ;;  %v617_v30 = vmul.f32 %v2814_v25, %v3521_v24 }
  0xe5   : > { %v3039_v28 = vpack.c.bf16 %v2814_v25, %v531_v26  ;;  %v616_v29 = vmul.f32 %v3521_v24, %v531_v26 }
  0xe6   : > { %v636_v37 = vsel %vm632_vm2, %v617_v30, 0.0 }
  0xe7   : > { %v2817_v31 = vpop.f32.mrb[2].mxu0  ;;  %3041 = vmatpush3.bf16.xpose.msk.msra.mxu1 %vm3525_vm3, %v3039_v28  ;;  %2871 = vmatprep.subr.bf16.mxu0 %v3039_v28  ;;  %v633_v32 = vsel %vm632_vm2, %v616_v29, 0.0 }
  0xe8   : > { %2872 = vmatpush3.bf16.msra.mxu0 %v3039_v28  ;;  %634 = vadd.xlane.f32.xlu0 %v633_v32  ;;  %v541_v33 = vpop.f32.mrb[3].mxu0  ;;  %v619_v34 = vmul.f32 %v2817_v31, %v3521_v24 }
  0xe9   : > { %v3043_v35 = vpack.c.bf16 %v2817_v31, %v541_v33  ;;  %v618_v36 = vmul.f32 %v3521_v24, %v541_v33  ;;  %3042 = vmatprep.subr.bf16.mxu1 %v3373_v22  ;;  %v823_v31 = vld [vmem:[%s3605_s26 + $0x8] sm:$0xff]  ;;  %v822_v33 = vld [vmem:[%s3605_s26] sm:$0xff] }
  0xea   : > { %v642_v41 = vsel %vm632_vm2, %v619_v34, 0.0  ;;  %v825_v34 = vld [vmem:[%s3605_s26 + $0x18] sm:$0xff] }
  0xeb   : > { %v639_v38 = vsel %vm632_vm2, %v618_v36, 0.0  ;;  %2873 = vmatprep.subr.bf16.mxu0 %v3043_v35  ;;  %v2820_v39 = vpop.f32.mrb[4].mxu0 }
  0xec   : > { %637 = vadd.xlane.f32.xlu0 %v636_v37  ;;  %640 = vadd.xlane.f32.xlu1 %v639_v38  ;;  %v551_v40 = vpop.f32.mrb[5].mxu0  ;;  %v621_v42 = vmul.f32 %v2820_v39, %v3521_v24 }
  0xed   : > { %2874 = vmatpush3.bf16.msra.mxu0 %v3043_v35  ;;  %v620_v43 = vmul.f32 %v3521_v24, %v551_v40  ;;  %v3047_v44 = vpack.c.bf16 %v2820_v39, %v551_v40 }
  0xee   : > { %v648_v48 = vsel %vm632_vm2, %v621_v42, 0.0 }
  0xef   : > { %3045 = vmatpush3.bf16.xpose.msk.msra.mxu1 %vm3525_vm3, %v3043_v35  ;;  %2875 = vmatprep.subr.bf16.mxu0 %v3047_v44  ;;  %v645_v45 = vsel %vm632_vm2, %v620_v43, 0.0  ;;  %v2823_v46 = vpop.f32.mrb[6].mxu0  ;;  %v824_v35 = vld [vmem:[%s3605_s26 + $0x10] sm:$0xff] }
  0xf0   : > { %643 = vadd.xlane.f32.xlu1 %v642_v41  ;;  %3046 = vmatprep.subr.bf16.mxu1 %v3373_v22  ;;  %v561_v47 = vpop.f32.mrb[7].mxu0  ;;  %v623_v49 = vmul.f32 %v2823_v46, %v3521_v24  ;;  %v827_v41 = vld [vmem:[%s3605_s26 + $0x28] sm:$0xff] }
  0xf1   : > { %2876 = vmatpush3.bf16.msra.mxu0 %v3047_v44  ;;  %646 = vadd.xlane.f32.xlu0 %v645_v45  ;;  %v622_v50 = vmul.f32 %v3521_v24, %v561_v47  ;;  %v3051_v51 = vpack.c.bf16 %v2823_v46, %v561_v47 }
  0xf2   : > { %v654_v55 = vsel %vm632_vm2, %v623_v49, 0.0 }
  0xf3   : > { %2877 = vmatprep.subr.bf16.mxu0 %v3051_v51  ;;  %v651_v52 = vsel %vm632_vm2, %v622_v50, 0.0  ;;  %v2826_v53 = vpop.f32.mrb[8].mxu0 }
  0xf4   : > { %649 = vadd.xlane.f32.xlu1 %v648_v48  ;;  %v571_v54 = vpop.f32.mrb[9].mxu0  ;;  %v625_v56 = vmul.f32 %v2826_v53, %v3521_v24  ;;  %v826_v48 = vld [vmem:[%s3605_s26 + $0x20] sm:$0xff] }
  0xf5   : > { %2878 = vmatpush3.bf16.msra.mxu0 %v3051_v51  ;;  %652 = vadd.xlane.f32.xlu0 %v651_v52  ;;  %v624_v57 = vmul.f32 %v3521_v24, %v571_v54  ;;  %v3055_v58 = vpack.c.bf16 %v2826_v53, %v571_v54 }
  0xf6   : > { %v660_v62 = vsel %vm632_vm2, %v625_v56, 0.0 }
  0xf7   : > { %3049 = vmatpush3.bf16.xpose.msk.msra.mxu1 %vm3525_vm3, %v3047_v44  ;;  %2879 = vmatprep.subr.bf16.mxu0 %v3055_v58  ;;  %v657_v59 = vsel %vm632_vm2, %v624_v57, 0.0  ;;  %v2829_v60 = vpop.f32.mrb[10].mxu0 }
  0xf8   : > { %3050 = vmatprep.subr.bf16.mxu1 %v3373_v22  ;;  %655 = vadd.xlane.f32.xlu1 %v654_v55  ;;  %v581_v61 = vpop.f32.mrb[11].mxu0  ;;  %v627_v63 = vmul.f32 %v2829_v60, %v3521_v24 }
  0xf9   : > { %2880 = vmatpush3.bf16.msra.mxu0 %v3055_v58  ;;  %658 = vadd.xlane.f32.xlu0 %v657_v59  ;;  %v626_v0 = vmul.f32 %v3521_v24, %v581_v61  ;;  %v3059_v1 = vpack.c.bf16 %v2829_v60, %v581_v61  ;;  %v829_v61 = vld [vmem:[%s3605_s26 + $0x38] sm:$0xff] }
  0xfa   : > { %v666_v5 = vsel %vm632_vm2, %v627_v63, 0.0 }
  0xfb   : > { %2881 = vmatprep.subr.bf16.mxu0 %v3059_v1  ;;  %v663_v2 = vsel %vm632_vm2, %v626_v0, 0.0  ;;  %v2832_v3 = vpop.f32.mrb[12].mxu0 }
  0xfc   : > { %661 = vadd.xlane.f32.xlu1 %v660_v62  ;;  %v591_v4 = vpop.f32.mrb[13].mxu0  ;;  %v629_v6 = vmul.f32 %v2832_v3, %v3521_v24  ;;  %v828_v62 = vld [vmem:[%s3605_s26 + $0x30] sm:$0xff] }
  0xfd   : > { %2882 = vmatpush3.bf16.msra.mxu0 %v3059_v1  ;;  %664 = vadd.xlane.f32.xlu0 %v663_v2  ;;  %v628_v7 = vmul.f32 %v3521_v24, %v591_v4  ;;  %v3063_v8 = vpack.c.bf16 %v2832_v3, %v591_v4 }
  0xfe   : > { %v672_v12 = vsel %vm632_vm2, %v629_v6, 0.0 }
  0xff   : > { %3053 = vmatpush3.bf16.xpose.msk.msra.mxu1 %vm3525_vm3, %v3051_v51  ;;  %2883 = vmatprep.subr.bf16.mxu0 %v3063_v8  ;;  %v669_v9 = vsel %vm632_vm2, %v628_v7, 0.0  ;;  %v2835_v10 = vpop.f32.mrb[14].mxu0 }
 0x100   : > { %3054 = vmatprep.subr.bf16.mxu1 %v3373_v22  ;;  %667 = vadd.xlane.f32.xlu1 %v666_v5  ;;  %v601_v11 = vpop.f32.mrb[15].mxu0  ;;  %v631_v13 = vmul.f32 %v2835_v10, %v3521_v24 }
 0x101   : > { %2884 = vmatpush3.bf16.msra.mxu0 %v3063_v8  ;;  %670 = vadd.xlane.f32.xlu0 %v669_v9  ;;  %v630_v14 = vmul.f32 %v3521_v24, %v601_v11  ;;  %v3067_v15 = vpack.c.bf16 %v2835_v10, %v601_v11  ;;  %v3595_v24 = vshrl.u32 %v802_v19, 7  ;;  %v830_v11 = vld [vmem:[%s3605_s26 + $0x40] sm:$0xff] }
 0x102   : > { %v678_v17 = vsel %vm632_vm2, %v631_v13, 0.0 }
 0x103   : > { %2885 = vmatprep.subr.bf16.mxu0 %v3067_v15  ;;  %v675_v16 = vsel %vm632_vm2, %v630_v14, 0.0  ;;  %v804_v25 = vsub.s32 0, %v3595_v24  ;;  %v3350_v24 = vld [vmem:[%s3605_s26] sm:$0xff] }
 0x104   : > { %673 = vadd.xlane.f32.xlu1 %v672_v12 }
 0x105   : > { %2886 = vmatpush3.bf16.msra.mxu0 %v3067_v15  ;;  %676 = vadd.xlane.f32.xlu0 %v675_v16 }
 0x106   : > { %3074 = vmatprep.subr.bf16.mxu0 %v3373_v22 }
 0x107   : > { %3057 = vmatpush3.bf16.xpose.msk.msra.mxu1 %vm3525_vm3, %v3055_v58 }
 0x108   : > { %3058 = vmatprep.subr.bf16.mxu1 %v3373_v22  ;;  %679 = vadd.xlane.f32.xlu1 %v678_v17 }
 0x10f   : > { %3061 = vmatpush3.bf16.xpose.msk.msra.mxu1 %vm3525_vm3, %v3059_v1 }
 0x110   : > { %3062 = vmatprep.subr.bf16.mxu1 %v3373_v22 }
 0x117   : > { %3065 = vmatpush3.bf16.xpose.msk.msra.mxu1 %vm3525_vm3, %v3063_v8  ;;  %v831_v8 = vld [vmem:[%s3605_s26 + $0x48] sm:$0xff] }
 0x118   : > { %3066 = vmatprep.subr.bf16.mxu1 %v3373_v22 }
 0x11f   : > { %3069 = vmatpush3.bf16.xpose.msk.msra.mxu1 %vm3525_vm3, %v3067_v15 }
 0x126   : > { %2869 = vmatmul.mubr.msk.f32.vlgmr.msra.gmra.mrb[0].mxu1 %vm632_vm2, %v415_v18 }
 0x175   : > { %v635_v21 = vpop.xlane.xlu0 %634 }
 0x179   : > { %v641_v20 = vpop.xlane.xlu1 %640  ;;  %v638_v27 = vpop.xlane.xlu0 %637 }
 0x17d   : > { %v644_v26 = vpop.xlane.xlu1 %643 }
 0x17e   : > { %v647_v36 = vpop.xlane.xlu0 %646 }
 0x181   : > { %v650_v32 = vpop.xlane.xlu1 %649 }
 0x182   : > { %v653_v51 = vpop.xlane.xlu0 %652 }
 0x185   : > { %v656_v49 = vpop.xlane.xlu1 %655 }
 0x186   : > { %v659_v0 = vpop.xlane.xlu0 %658 }
 0x189   : > { %v662_v63 = vpop.xlane.xlu1 %661 }
 0x18a   : > { %v665_v12 = vpop.xlane.xlu0 %664 }
 0x18d   : > { %v668_v10 = vpop.xlane.xlu1 %667 }
 0x1f9   : > { %v798_v28 = vpop.f32.mrb[0].mxu1 }
 0x1fa   : > { %v3609_v29 = vrot.slane %v798_v28, %v804_v25  ;;  %v2870_v30 = vpop.f32.mrb[1].mxu1 }
 0x1fb   : > { %v671_v30 = vpop.xlane.xlu0 %670 }
 0x1fc   : > { %v807_v37 = vadd.f32 %v3609_v29, %v638_v27  ;;  %v806_v38 = vadd.f32 %v3609_v29, %v635_v21  ;;  %v809_v39 = vadd.f32 %v3609_v29, %v644_v26  ;;  %v808_v40 = vadd.f32 %v3609_v29, %v641_v20  ;;  %v833_v21 = vld [vmem:[%s3605_s26 + $0x58] sm:$0xff]  ;;  %v832_v26 = vld [vmem:[%s3605_s26 + $0x50] sm:$0xff]  ;;  %v674_v27 = vpop.xlane.xlu1 %673 }
 0x1fd   : > { %v811_v42 = vadd.f32 %v3609_v29, %v650_v32  ;;  %v810_v43 = vadd.f32 %v3609_v29, %v647_v36  ;;  %v813_v55 = vadd.f32 %v3609_v29, %v656_v49  ;;  %v812_v56 = vadd.f32 %v3609_v29, %v653_v51  ;;  %v836_v51 = vld [vmem:[%s3605_s26 + $0x70] sm:$0xff] }
 0x1fe   : > { %v839_v44 = vmul.f32 %v823_v31, %v807_v37  ;;  %v838_v45 = vmul.f32 %v822_v33, %v806_v38  ;;  %v841_v46 = vmul.f32 %v825_v34, %v809_v39  ;;  %v840_v47 = vmul.f32 %v824_v35, %v808_v40  ;;  %v835_v35 = vld [vmem:[%s3605_s26 + $0x68] sm:$0xff]  ;;  %v834_v39 = vld [vmem:[%s3605_s26 + $0x60] sm:$0xff] }
 0x1ff   : > { %v843_v50 = vmul.f32 %v827_v41, %v811_v42  ;;  %v842_v54 = vmul.f32 %v826_v48, %v810_v43  ;;  %v845_v2 = vmul.f32 %v829_v61, %v813_v55  ;;  %v844_v3 = vmul.f32 %v828_v62, %v812_v56  ;;  %v677_v42 = vpop.xlane.xlu0 %676 }
 0x200   : > { %vm855_vm4 = vcmp.gt.f32.partialorder %v839_v44, 0.0  ;;  %v871_v52 = vmul.f32 0.2, %v839_v44  ;;  %vm854_vm5 = vcmp.gt.f32.partialorder %v838_v45, 0.0  ;;  %v870_v53 = vmul.f32 0.2, %v838_v45  ;;  %v680_v41 = vpop.xlane.xlu1 %679 }
 0x201   : > { %v873_v59 = vmul.f32 0.2, %v841_v46  ;;  %v872_v60 = vmul.f32 0.2, %v840_v47  ;;  %vm857_vm6 = vcmp.gt.f32.partialorder %v841_v46, 0.0  ;;  %vm856_vm7 = vcmp.gt.f32.partialorder %v840_v47, 0.0 }
 0x202   : > { %v3625_v57 = vsel %vm855_vm4, %v839_v44, %v871_v52  ;;  %v3627_v58 = vsel %vm854_vm5, %v838_v45, %v870_v53  ;;  %v875_v1 = vmul.f32 0.2, %v843_v50  ;;  %vm859_vm8 = vcmp.gt.f32.partialorder %v843_v50, 0.0 }
 0x203   : > { %904 = vmax.xlane.f32.xlu1 %v3625_v57  ;;  %902 = vmax.xlane.f32.xlu0 %v3627_v58  ;;  %v815_v4 = vadd.f32 %v3609_v29, %v662_v63  ;;  %v3634_v5 = vsel %vm857_vm6, %v841_v46, %v873_v59  ;;  %v3636_v6 = vsel %vm856_vm7, %v840_v47, %v872_v60  ;;  %v874_v7 = vmul.f32 0.2, %v842_v54 }
 0x204   : > { %v814_v9 = vadd.f32 %v3609_v29, %v659_v0  ;;  %vm858_vm9 = vcmp.gt.f32.partialorder %v842_v54, 0.0  ;;  %v3643_v13 = vsel %vm859_vm8, %v843_v50, %v875_v1  ;;  %v877_v14 = vmul.f32 0.2, %v845_v2  ;;  %v837_v50 = vld [vmem:[%s3605_s26 + $0x78] sm:$0xff] }
 0x205   : > { %v847_v15 = vmul.f32 %v831_v8, %v815_v4  ;;  %v817_v16 = vadd.f32 %v3609_v29, %v668_v10  ;;  %v816_v17 = vadd.f32 %v3609_v29, %v665_v12  ;;  %v3647_v18 = vsel %vm858_vm9, %v842_v54, %v874_v7 }
 0x206   : > { %vm861_vm10 = vcmp.gt.f32.partialorder %v845_v2, 0.0  ;;  %v876_v19 = vmul.f32 0.2, %v844_v3  ;;  %v846_v20 = vmul.f32 %v830_v11, %v814_v9  ;;  %vm860_vm11 = vcmp.gt.f32.partialorder %v844_v3, 0.0 }
 0x207   : > { %908 = vmax.xlane.f32.xlu1 %v3634_v5  ;;  %906 = vmax.xlane.f32.xlu0 %v3636_v6  ;;  %v819_v28 = vadd.f32 %v3609_v29, %v674_v27  ;;  %v3654_v31 = vsel %vm861_vm10, %v845_v2, %v877_v14  ;;  %v879_v32 = vmul.f32 0.2, %v847_v15  ;;  %v849_v33 = vmul.f32 %v833_v21, %v817_v16 }
 0x208   : > { %v848_v34 = vmul.f32 %v832_v26, %v816_v17  ;;  %v3657_v36 = vsel %vm860_vm11, %v844_v3, %v876_v19  ;;  %vm863_vm12 = vcmp.gt.f32.partialorder %v847_v15, 0.0  ;;  %v878_v37 = vmul.f32 0.2, %v846_v20 }
 0x209   : > { %v818_v38 = vadd.f32 %v3609_v29, %v671_v30  ;;  %vm862_vm13 = vcmp.gt.f32.partialorder %v846_v20, 0.0  ;;  %v851_v40 = vmul.f32 %v835_v35, %v819_v28  ;;  %v3663_v43 = vsel %vm863_vm12, %v847_v15, %v879_v32 }
 0x20a   : > { %vm865_vm14 = vcmp.gt.f32.partialorder %v849_v33, 0.0  ;;  %v881_v44 = vmul.f32 0.2, %v849_v33  ;;  %v880_v45 = vmul.f32 0.2, %v848_v34  ;;  %v3665_v46 = vsel %vm862_vm13, %v846_v20, %v878_v37 }
 0x20b   : > { %912 = vmax.xlane.f32.xlu1 %v3643_v13  ;;  %910 = vmax.xlane.f32.xlu0 %v3647_v18  ;;  %v850_v47 = vmul.f32 %v834_v39, %v818_v38  ;;  %v821_v48 = vadd.f32 %v3609_v29, %v680_v41  ;;  %v820_v49 = vadd.f32 %v3609_v29, %v677_v42  ;;  %vm864_vm15 = vcmp.gt.f32.partialorder %v848_v34, 0.0  ;;  %v3726_v42 = vld [vmem:[%s3699_s30 + $0x10] sm:$0xff]  }
 0x20c   : > { %v3673_v52 = vsel %vm865_vm14, %v849_v33, %v881_v44  ;;  %v883_v53 = vmul.f32 0.2, %v851_v40  ;;  %v3675_v54 = vsel %vm864_vm15, %v848_v34, %v880_v45  ;;  %vm867_vm0 = vcmp.gt.f32.partialorder %v851_v40, 0.0 }
 0x20d   : > { %v882_v55 = vmul.f32 0.2, %v850_v47  ;;  %v853_v56 = vmul.f32 %v837_v50, %v821_v48  ;;  %v852_v59 = vmul.f32 %v836_v51, %v820_v49  ;;  %vm866_vm3 = vcmp.gt.f32.partialorder %v850_v47, 0.0 }
 0x20e   : > { %v3679_v29 = vsel %vm867_vm0, %v851_v40, %v883_v53  ;;  %v2656_v50 = vunpack.c.h.bf16 %v3726_v42  ;;  %v2655_v51 = vunpack.c.l.bf16 %v3726_v42 }
 0x20f   : > { %916 = vmax.xlane.f32.xlu1 %v3654_v31  ;;  %914 = vmax.xlane.f32.xlu0 %v3657_v36  ;;  %v3681_v60 = vsel %vm866_vm3, %v850_v47, %v882_v55  ;;  %v885_v61 = vmul.f32 0.2, %v853_v56  ;;  %v884_v62 = vmul.f32 0.2, %v852_v59  ;;  %vm869_vm4 = vcmp.gt.f32.partialorder %v853_v56, 0.0 }
 0x210   : > { %vm868_vm5 = vcmp.gt.f32.partialorder %v852_v59, 0.0 }
 0x211   : > { %v3685_v63 = vsel %vm869_vm4, %v853_v56, %v885_v61  ;;  %v3687_v0 = vsel %vm868_vm5, %v852_v59, %v884_v62  ;;  %v3743_v59 = vld [vmem:[%s3699_s30 + $0x18] sm:$0xff]  }
 0x213   : > { %920 = vmax.xlane.f32.xlu1 %v3663_v43  ;;  %918 = vmax.xlane.f32.xlu0 %v3665_v46 }
 0x217   : > { %924 = vmax.xlane.f32.xlu1 %v3673_v52  ;;  %922 = vmax.xlane.f32.xlu0 %v3675_v54 }
 0x21b   : > { %928 = vmax.xlane.f32.xlu1 %v3679_v29  ;;  %926 = vmax.xlane.f32.xlu0 %v3681_v60 }
 0x21f   : > { %932 = vmax.xlane.f32.xlu1 %v3685_v63  ;;  %930 = vmax.xlane.f32.xlu0 %v3687_v0 }
 0x290   : > { %v905_v1 = vpop.xlane.xlu1 %904  ;;  %v903_v2 = vpop.xlane.xlu0 %902 }
 0x291   : > { %v935_v3 = vsub.f32 %v3625_v57, %v905_v1  ;;  %v934_v4 = vsub.f32 %v3627_v58, %v903_v2 }
 0x293   : > { %v952_v7 = vmul.f32 1.442695, %v935_v3  ;;  %v950_v8 = vmul.f32 1.442695, %v934_v4  ;;  %v2660_v4 = vunpack.c.h.bf16 %v3743_v59 }
 0x294   : > { %v909_v9 = vpop.xlane.xlu1 %908  ;;  %v907_v10 = vpop.xlane.xlu0 %906 }
 0x295   : > { %3125 = vpow2.f32 %v952_v7  ;;  %v937_v11 = vsub.f32 %v3634_v5, %v909_v9  ;;  %v936_v12 = vsub.f32 %v3636_v6, %v907_v10  ;;  %v3704_v5 = vld [vmem:[%s3699_s30] sm:$0xff]   ;;  %v2659_v7 = vunpack.c.l.bf16 %v3743_v59 }
 0x296   : > { %3127 = vpow2.f32 %v950_v8  ;;  %v2648_v26 = vunpack.c.h.bf16 %v3704_v5  ;;  %v2647_v30 = vunpack.c.l.bf16 %v3704_v5 }
 0x297   : > { %v956_v57 = vmul.f32 1.442695, %v937_v11  ;;  %v954_v14 = vmul.f32 1.442695, %v936_v12  ;;  %v3760_v11 = vld [vmem:[%s3699_s30 + $0x20] sm:$0xff]  }
 0x298   : > { %v913_v58 = vpop.xlane.xlu1 %912  ;;  %v911_v15 = vpop.xlane.xlu0 %910 }
 0x299   : > { %3129 = vpow2.f32 %v956_v57  ;;  %v939_v16 = vsub.f32 %v3643_v13, %v913_v58  ;;  %v938_v17 = vsub.f32 %v3647_v18, %v911_v15  ;;  %v3711_v13 = vld [vmem:[%s3699_s30 + $0x8] sm:$0xff]  }
 0x29a   : > { %3131 = vpow2.f32 %v954_v14 }
 0x29b   : > { %v960_v6 = vmul.f32 1.442695, %v939_v16  ;;  %v958_v19 = vmul.f32 1.442695, %v938_v17  ;;  %v2664_v16 = vunpack.c.h.bf16 %v3760_v11  ;;  %v2663_v17 = vunpack.c.l.bf16 %v3760_v11 }
 0x29c   : > { %v917_v20 = vpop.xlane.xlu1 %916  ;;  %v915_v21 = vpop.xlane.xlu0 %914 }
 0x29d   : > { %3133 = vpow2.f32 %v960_v6  ;;  %v941_v27 = vsub.f32 %v3654_v31, %v917_v20  ;;  %v940_v28 = vsub.f32 %v3657_v36, %v915_v21  ;;  %v2652_v31 = vunpack.c.h.bf16 %v3711_v13  ;;  %v3777_v21 = vld [vmem:[%s3699_s30 + $0x28] sm:$0xff]  }
 0x29e   : > { %3135 = vpow2.f32 %v958_v19  ;;  %v2651_v36 = vunpack.c.l.bf16 %v3711_v13 }
 0x29f   : > { %v3126_v18 = vpop.eup %3125  ;;  %v964_v32 = vmul.f32 1.442695, %v941_v27  ;;  %v962_v33 = vmul.f32 1.442695, %v940_v28 }
 0x2a0   : > { %v3128_v34 = vpop.eup %3127  ;;  %v921_v35 = vpop.xlane.xlu1 %920  ;;  %v3715_v38 = vmul.f32 %v3126_v18, %v2648_v26 }
 0x2a1   : > { %v919_v37 = vpop.xlane.xlu0 %918  ;;  %3137 = vpow2.f32 %v964_v32  ;;  %v943_v39 = vsub.f32 %v3663_v43, %v921_v35  ;;  %v3723_v41 = vmul.f32 %v3128_v34, %v2647_v30  ;;  %v2667_v34 = vunpack.c.l.bf16 %v3777_v21  ;;  %v3792_v35 = vld [vmem:[%s3699_s30 + $0x30] sm:$0xff]  }
 0x2a2   : > { %v942_v40 = vsub.f32 %v3665_v46, %v919_v37  ;;  %3139 = vpow2.f32 %v962_v33  ;;  %1032 = vadd.xlane.f32.xlu1 %v3715_v38 }
 0x2a3   : > { %v3130_v44 = vpop.eup %3129  ;;  %v968_v45 = vmul.f32 1.442695, %v943_v39  ;;  %1030 = vadd.xlane.f32.xlu0 %v3723_v41 }
 0x2a4   : > { %v966_v47 = vmul.f32 1.442695, %v942_v40  ;;  %v3132_v48 = vpop.eup %3131  ;;  %v925_v49 = vpop.xlane.xlu1 %924  ;;  %v3732_v46 = vmul.f32 %v3130_v44, %v2652_v31  ;;  %v2672_v44 = vunpack.c.h.bf16 %v3792_v35 }
 0x2a5   : > { %v923_v43 = vpop.xlane.xlu0 %922  ;;  %3141 = vpow2.f32 %v968_v45  ;;  %v945_v53 = vsub.f32 %v3673_v52, %v925_v49  ;;  %v3740_v56 = vmul.f32 %v3132_v48, %v2651_v36  ;;  %v3807_v48 = vld [vmem:[%s3699_s30 + $0x38] sm:$0xff]  }
 0x2a6   : > { %v944_v55 = vsub.f32 %v3675_v54, %v923_v43  ;;  %3143 = vpow2.f32 %v966_v47  ;;  %1036 = vadd.xlane.f32.xlu1 %v3732_v46  ;;  %v2671_v47 = vunpack.c.l.bf16 %v3792_v35 }
 0x2a7   : > { %v3134_v61 = vpop.eup %3133  ;;  %v972_v62 = vmul.f32 1.442695, %v945_v53  ;;  %1034 = vadd.xlane.f32.xlu0 %v3740_v56 }
 0x2a8   : > { %v970_v1 = vmul.f32 1.442695, %v944_v55  ;;  %v3136_v2 = vpop.eup %3135  ;;  %v929_v3 = vpop.xlane.xlu1 %928  ;;  %v3749_v54 = vmul.f32 %v3134_v61, %v2656_v50  ;;  %v2676_v55 = vunpack.c.h.bf16 %v3807_v48 }
 0x2a9   : > { %v927_v52 = vpop.xlane.xlu0 %926  ;;  %3145 = vpow2.f32 %v972_v62  ;;  %v947_v8 = vsub.f32 %v3679_v29, %v929_v3  ;;  %v3757_v10 = vmul.f32 %v3136_v2, %v2655_v51  ;;  %v2675_v62 = vunpack.c.l.bf16 %v3807_v48 }
 0x2aa   : > { %v946_v9 = vsub.f32 %v3681_v60, %v927_v52  ;;  %3147 = vpow2.f32 %v970_v1  ;;  %1040 = vadd.xlane.f32.xlu1 %v3749_v54 }
 0x2ab   : > { %v3138_v12 = vpop.eup %3137  ;;  %v976_v57 = vmul.f32 1.442695, %v947_v8  ;;  %1038 = vadd.xlane.f32.xlu0 %v3757_v10 }
 0x2ac   : > { %v974_v14 = vmul.f32 1.442695, %v946_v9  ;;  %v3140_v58 = vpop.eup %3139  ;;  %v933_v15 = vpop.xlane.xlu1 %932  ;;  %v3766_v60 = vmul.f32 %v3138_v12, %v2660_v4 }
 0x2ad   : > { %v931_v29 = vpop.xlane.xlu0 %930  ;;  %3149 = vpow2.f32 %v976_v57  ;;  %v949_v6 = vsub.f32 %v3685_v63, %v933_v15  ;;  %v3774_v20 = vmul.f32 %v3140_v58, %v2659_v7 }
 0x2ae   : > { %v948_v19 = vsub.f32 %v3687_v0, %v931_v29  ;;  %3151 = vpow2.f32 %v974_v14  ;;  %1044 = vadd.xlane.f32.xlu1 %v3766_v60  ;;  %v2668_v0 = vunpack.c.h.bf16 %v3777_v21 }
 0x2af   : > { %v3142_v27 = vpop.eup %3141  ;;  %v980_v28 = vmul.f32 1.442695, %v949_v6  ;;  %1042 = vadd.xlane.f32.xlu0 %v3774_v20 }
 0x2b0   : > { %v978_v18 = vmul.f32 1.442695, %v948_v19  ;;  %v3144_v32 = vpop.eup %3143  ;;  %v3783_v63 = vmul.f32 %v3142_v27, %v2664_v16 }
 0x2b1   : > { %3153 = vpow2.f32 %v980_v28  ;;  %v3788_v33 = vmul.f32 %v3144_v32, %v2663_v17 }
 0x2b2   : > { %3155 = vpow2.f32 %v978_v18  ;;  %1048 = vadd.xlane.f32.xlu1 %v3783_v63 }
 0x2b3   : > { %v3146_v37 = vpop.eup %3145  ;;  %1046 = vadd.xlane.f32.xlu0 %v3788_v33 }
 0x2b4   : > { %v3148_v39 = vpop.eup %3147  ;;  %v3798_v40 = vmul.f32 %v3146_v37, %v2668_v0 }
 0x2b5   : > { %v3803_v45 = vmul.f32 %v3148_v39, %v2667_v34 }
 0x2b6   : > { %1052 = vadd.xlane.f32.xlu1 %v3798_v40 }
 0x2b7   : > { %v3150_v49 = vpop.eup %3149  ;;  %1050 = vadd.xlane.f32.xlu0 %v3803_v45 }
 0x2b8   : > { %v3152_v43 = vpop.eup %3151  ;;  %v3813_v53 = vmul.f32 %v3150_v49, %v2672_v44 }
 0x2b9   : > { %v3818_v61 = vmul.f32 %v3152_v43, %v2671_v47 }
 0x2ba   : > { %1056 = vadd.xlane.f32.xlu1 %v3813_v53 }
 0x2bb   : > { %v3154_v1 = vpop.eup %3153  ;;  %1054 = vadd.xlane.f32.xlu0 %v3818_v61 }
 0x2bc   : > { %v3156_v2 = vpop.eup %3155  ;;  %v3825_v3 = vmul.f32 %v3154_v1, %v2676_v55 }
 0x2bd   : > { %v3829_v52 = vmul.f32 %v3156_v2, %v2675_v62 }
 0x2be   : > { %1060 = vadd.xlane.f32.xlu1 %v3825_v3 }
 0x2bf   : > { %1058 = vadd.xlane.f32.xlu0 %v3829_v52 }
 0x32f   : > { %v1033_v8 = vpop.xlane.xlu1 %1032 }
 0x330   : > { %v1063_v9 = vmax.f32 %v1033_v8, 1e-30  ;;  %v1031_v12 = vpop.xlane.xlu0 %1030 }
 0x331   : > { %v1062_v57 = vmax.f32 %v1031_v12, 1e-30 }
 0x332   : > { %3157 = vrcp.f32 %v1063_v9 }
 0x333   : > { %3159 = vrcp.f32 %v1062_v57  ;;  %v1037_v14 = vpop.xlane.xlu1 %1036 }
 0x334   : > { %v1065_v58 = vmax.f32 %v1037_v14, 1e-30  ;;  %v1035_v15 = vpop.xlane.xlu0 %1034 }
 0x335   : > { %v1064_v29 = vmax.f32 %v1035_v15, 1e-30 }
 0x336   : > { %3161 = vrcp.f32 %v1065_v58 }
 0x337   : > { %3163 = vrcp.f32 %v1064_v29  ;;  %v1041_v6 = vpop.xlane.xlu1 %1040 }
 0x338   : > { %v1067_v19 = vmax.f32 %v1041_v6, 1e-30  ;;  %v1039_v27 = vpop.xlane.xlu0 %1038 }
 0x339   : > { %v1066_v28 = vmax.f32 %v1039_v27, 1e-30 }
 0x33a   : > { %3165 = vrcp.f32 %v1067_v19 }
 0x33b   : > { %3167 = vrcp.f32 %v1066_v28  ;;  %v1045_v18 = vpop.xlane.xlu1 %1044 }
 0x33c   : > { %v3158_v32 = vpop.eup %3157  ;;  %v1069_v37 = vmax.f32 %v1045_v18, 1e-30  ;;  %v1043_v39 = vpop.xlane.xlu0 %1042 }
 0x33d   : > { %v3160_v49 = vpop.eup %3159  ;;  %v1068_v43 = vmax.f32 %v1043_v39, 1e-30  ;;  %v1095_v1 = vmul.f32 %v3158_v32, %v3715_v38 }
 0x33e   : > { %3169 = vrcp.f32 %v1069_v37  ;;  %v1094_v2 = vmul.f32 %v3160_v49, %v3723_v41 }
 0x33f   : > { %3171 = vrcp.f32 %v1068_v43  ;;  %v1049_v8 = vpop.xlane.xlu1 %1048 }
 0x340   : > { %v3162_v9 = vpop.eup %3161  ;;  %v1071_v12 = vmax.f32 %v1049_v8, 1e-30  ;;  %v1047_v57 = vpop.xlane.xlu0 %1046  ;;  %v1110_v14 = vpack.c.bf16 %v1095_v1, %v1094_v2 }
 0x341   : > { %v3164_v58 = vpop.eup %3163  ;;  %v1097_v15 = vmul.f32 %v3162_v9, %v3732_v46  ;;  %v1070_v29 = vmax.f32 %v1047_v57, 1e-30 }
 0x342   : > { %v1096_v6 = vmul.f32 %v3164_v58, %v3740_v56  ;;  %3173 = vrcp.f32 %v1071_v12  ;;  %2887 = vmatprep.mubr.bf16.mxu0 %v1110_v14 }
 0x343   : > { %3175 = vrcp.f32 %v1070_v29  ;;  %v1053_v19 = vpop.xlane.xlu1 %1052 }
 0x344   : > { %v3166_v38 = vpop.eup %3165  ;;  %v1073_v27 = vmax.f32 %v1053_v19, 1e-30  ;;  %v1051_v28 = vpop.xlane.xlu0 %1050  ;;  %v1111_v41 = vpack.c.bf16 %v1097_v15, %v1096_v6 }
 0x345   : > { %v3168_v18 = vpop.eup %3167  ;;  %v1072_v32 = vmax.f32 %v1051_v28, 1e-30  ;;  %v1099_v37 = vmul.f32 %v3166_v38, %v3749_v54 }
 0x346   : > { %3177 = vrcp.f32 %v1073_v27  ;;  %2888 = vmatmul.mubr.bf16.vlgmr.msra.gmra.mrb[16].mxu0 %v1111_v41  ;;  %v1098_v39 = vmul.f32 %v3168_v18, %v3757_v10 }
 0x347   : > { %3179 = vrcp.f32 %v1072_v32  ;;  %v1057_v46 = vpop.xlane.xlu1 %1056 }
 0x348   : > { %v3170_v49 = vpop.eup %3169  ;;  %v1075_v56 = vmax.f32 %v1057_v46, 1e-30  ;;  %v1055_v43 = vpop.xlane.xlu0 %1054  ;;  %v1112_v1 = vpack.c.bf16 %v1099_v37, %v1098_v39 }
 0x349   : > { %v3172_v2 = vpop.eup %3171  ;;  %v1074_v8 = vmax.f32 %v1055_v43, 1e-30  ;;  %v1101_v9 = vmul.f32 %v3170_v49, %v3766_v60 }
 0x34a   : > { %3181 = vrcp.f32 %v1075_v56  ;;  %2891 = vmatprep.mubr.bf16.mxu0 %v1112_v1  ;;  %v1100_v12 = vmul.f32 %v3172_v2, %v3774_v20 }
 0x34b   : > { %3183 = vrcp.f32 %v1074_v8  ;;  %v1061_v54 = vpop.xlane.xlu1 %1060 }
 0x34c   : > { %v3174_v57 = vpop.eup %3173  ;;  %v1077_v14 = vmax.f32 %v1061_v54, 1e-30  ;;  %v1059_v58 = vpop.xlane.xlu0 %1058  ;;  %v1113_v10 = vpack.c.bf16 %v1101_v9, %v1100_v12 }
 0x34d   : > { %v3176_v15 = vpop.eup %3175  ;;  %v1076_v29 = vmax.f32 %v1059_v58, 1e-30  ;;  %v1103_v6 = vmul.f32 %v3174_v57, %v3783_v63 }
 0x34e   : > { %3185 = vrcp.f32 %v1077_v14  ;;  %2892 = vmatmul.mubr.bf16.gmra.mrb[20].mxu0 %v1113_v10  ;;  %v1102_v19 = vmul.f32 %v3176_v15, %v3788_v33 }
 0x34f   : > { %3187 = vrcp.f32 %v1076_v29 }
 0x350   : > { %v3178_v60 = vpop.eup %3177  ;;  %v1114_v38 = vpack.c.bf16 %v1103_v6, %v1102_v19 }
 0x351   : > { %v3180_v27 = vpop.eup %3179  ;;  %v1105_v20 = vmul.f32 %v3178_v60, %v3798_v40 }
 0x352   : > { %2895 = vmatprep.mubr.bf16.mxu0 %v1114_v38  ;;  %v1104_v28 = vmul.f32 %v3180_v27, %v3803_v45  ;;  %v1303_v45 = vld [vmem:[%s4423_s6] sm:$0xff] }
 0x354   : > { %v3182_v41 = vpop.eup %3181  ;;  %v1115_v18 = vpack.c.bf16 %v1105_v20, %v1104_v28 }
 0x355   : > { %v3184_v32 = vpop.eup %3183  ;;  %v1107_v37 = vmul.f32 %v3182_v41, %v3813_v53  ;;  %v1304_v53 = vld [vmem:[%s4423_s6 + $0x8] sm:$0xff] }
 0x356   : > { %2896 = vmatmul.mubr.bf16.gmra.mrb[24].mxu0 %v1115_v18  ;;  %v1106_v63 = vmul.f32 %v3184_v32, %v3818_v61  ;;  %v3070_v61 = vpack.c.bf16 %v1304_v53, %v1303_v45 }
 0x358   : > { %v3186_v39 = vpop.eup %3185  ;;  %v1116_v46 = vpack.c.bf16 %v1107_v37, %v1106_v63  ;;  %3071 = vmatprep.subr.bf16.mxu1 %v3070_v61 }
 0x359   : > { %v3188_v33 = vpop.eup %3187  ;;  %v1109_v49 = vmul.f32 %v3186_v39, %v3825_v3  ;;  %3073 = vmatpush3.bf16.msra.mxu1 %v3070_v61 }
 0x35a   : > { %2899 = vmatprep.mubr.bf16.mxu0 %v1116_v46  ;;  %v1108_v56 = vmul.f32 %v3188_v33, %v3829_v52 }
 0x35c   : > { %v1117_v40 = vpack.c.bf16 %v1109_v49, %v1108_v56 }
 0x35e   : > { %2900 = vmatmul.mubr.bf16.gmra.mrb[28].mxu0 %v1117_v40 }
 0x35f   : > { %2963 = vmatprep.mubr.msk.f32.mxu0 %vm3374_vm1, %v3375_v23 }
 0x419   : > { %v2889_v3 = vpop.f32.mrb[16].mxu0 }
 0x41a   : > { %v1243_v43 = vmul.f32 1.442695, %v2889_v3  ;;  %v1160_v1 = vpop.f32.mrb[17].mxu0  ;;  %vm1225_vm6 = vcmp.gt.f32.partialorder %v2889_v3, 0.0 }
 0x41b   : > { %v1239_v52 = vmul.f32 1.442695, %v1160_v1  ;;  %v2890_v2 = vpop.f32.mrb[18].mxu0  ;;  %vm1223_vm1 = vcmp.gt.f32.partialorder %v1160_v1, 0.0 }
 0x41c   : > { %3189 = vpow2.f32 %v1243_v43  ;;  %v1245_v8 = vmul.f32 1.442695, %v2890_v2  ;;  %v1163_v9 = vpop.f32.mrb[19].mxu0  ;;  %vm1226_vm8 = vcmp.gt.f32.partialorder %v2890_v2, 0.0 }
 0x41d   : > { %3191 = vpow2.f32 %v1239_v52  ;;  %v1241_v23 = vmul.f32 1.442695, %v1163_v9  ;;  %vm1224_vm7 = vcmp.gt.f32.partialorder %v1163_v9, 0.0 }
 0x41e   : > { %3193 = vpow2.f32 %v1245_v8 }
 0x41f   : > { %3195 = vpow2.f32 %v1241_v23 }
 0x421   : > { %v3857_v12 = vpop.f32.mrb[20].mxu0 }
 0x422   : > { %v1251_v54 = vmul.f32 1.442695, %v3857_v12  ;;  %v1176_v57 = vpop.f32.mrb[21].mxu0  ;;  %vm1229_vm10 = vcmp.gt.f32.partialorder %v3857_v12, 0.0 }
 0x423   : > { %v1247_v14 = vmul.f32 1.442695, %v1176_v57  ;;  %v3860_v58 = vpop.f32.mrb[22].mxu0  ;;  %vm1227_vm9 = vcmp.gt.f32.partialorder %v1176_v57, 0.0 }
 0x424   : > { %3197 = vpow2.f32 %v1251_v54  ;;  %v1253_v10 = vmul.f32 1.442695, %v3860_v58  ;;  %v1179_v15 = vpop.f32.mrb[23].mxu0  ;;  %vm1230_vm12 = vcmp.gt.f32.partialorder %v3860_v58, 0.0 }
 0x425   : > { %3199 = vpow2.f32 %v1247_v14  ;;  %v1249_v29 = vmul.f32 1.442695, %v1179_v15  ;;  %vm1228_vm11 = vcmp.gt.f32.partialorder %v1179_v15, 0.0 }
 0x426   : > { %v3190_v6 = vpop.eup %3189  ;;  %3201 = vpow2.f32 %v1253_v10 }
 0x427   : > { %v3192_v19 = vpop.eup %3191  ;;  %3203 = vpow2.f32 %v1249_v29  ;;  %v2567_v20 = vadd.f32 -1.0, %v3190_v6 }
 0x428   : > { %v3194_v60 = vpop.eup %3193  ;;  %v2565_v38 = vadd.f32 -1.0, %v3192_v19 }
 0x429   : > { %v3196_v27 = vpop.eup %3195  ;;  %v3863_v28 = vpop.f32.mrb[24].mxu0  ;;  %v2568_v46 = vadd.f32 -1.0, %v3194_v60  ;;  %v1289_v45 = vsel %vm1225_vm6, %v2889_v3, %v2567_v20  ;;  %vm1522_vm6 = vcmask 64512  }
 0x42a   : > { %v2566_v41 = vadd.f32 -1.0, %v3196_v27  ;;  %v1259_v18 = vmul.f32 1.442695, %v3863_v28  ;;  %v3866_v32 = vpop.f32.mrb[25].mxu0  ;;  %v1287_v37 = vsel %vm1223_vm1, %v1160_v1, %v2565_v38  ;;  %vm1233_vm15 = vcmp.gt.f32.partialorder %v3863_v28, 0.0 }
 0x42b   : > { %v1255_v63 = vmul.f32 1.442695, %v3866_v32  ;;  %v3869_v39 = vpop.f32.mrb[26].mxu0  ;;  %2907 = vmatprep.mubr.msk.f32.mxu1 %vm632_vm2, %v1287_v37  ;;  %v1290_v52 = vsel %vm1226_vm8, %v2890_v2, %v2568_v46  ;;  %vm1231_vm13 = vcmp.gt.f32.partialorder %v3866_v32, 0.0 }
 0x42c   : > { %v1288_v33 = vsel %vm1224_vm7, %v1163_v9, %v2566_v41  ;;  %3205 = vpow2.f32 %v1259_v18  ;;  %v1261_v49 = vmul.f32 1.442695, %v3869_v39  ;;  %v1195_v56 = vpop.f32.mrb[27].mxu0  ;;  %vm1234_vm0 = vcmp.gt.f32.partialorder %v3869_v39, 0.0  ;;  %vm3906_vm7 = vmpackc.low %vm1522_vm6, %vm1522_vm6 }
 0x42d   : > { %3207 = vpow2.f32 %v1255_v63  ;;  %v1257_v40 = vmul.f32 1.442695, %v1195_v56  ;;  %2908 = vmatmul.mubr.msk.f32.vlgmr.msra.gmra.mrb[2].mxu1 %vm632_vm2, %v1288_v33  ;;  %vm1232_vm14 = vcmp.gt.f32.partialorder %v1195_v56, 0.0 }
 0x42e   : > { %v3198_v53 = vpop.eup %3197  ;;  %3209 = vpow2.f32 %v1261_v49  ;;  %2910 = vmatprep.mubr.msk.f32.mxu1 %vm632_vm2, %v1289_v45 }
 0x42f   : > { %v3200_v61 = vpop.eup %3199  ;;  %3211 = vpow2.f32 %v1257_v40  ;;  %v2571_v9 = vadd.f32 -1.0, %v3198_v53 }
 0x430   : > { %v3202_v43 = vpop.eup %3201  ;;  %v2569_v1 = vadd.f32 -1.0, %v3200_v61 }
 0x431   : > { %v3204_v8 = vpop.eup %3203  ;;  %v2901_v23 = vpop.f32.mrb[28].mxu0  ;;  %2911 = vmatmul.mubr.msk.f32.gmra.mrb[4].mxu1 %vm632_vm2, %v1290_v52  ;;  %v2572_v19 = vadd.f32 -1.0, %v3202_v43  ;;  %v1293_v20 = vsel %vm1229_vm10, %v3857_v12, %v2571_v9 }
 0x432   : > { %v2570_v54 = vadd.f32 -1.0, %v3204_v8  ;;  %v1267_v14 = vmul.f32 1.442695, %v2901_v23  ;;  %v1208_v10 = vpop.f32.mrb[29].mxu0  ;;  %v1291_v3 = vsel %vm1227_vm9, %v1176_v57, %v2569_v1  ;;  %vm1237_vm5 = vcmp.gt.f32.partialorder %v2901_v23, 0.0 }
 0x433   : > { %v1263_v29 = vmul.f32 1.442695, %v1208_v10  ;;  %v2902_v6 = vpop.f32.mrb[30].mxu0  ;;  %2913 = vmatprep.mubr.msk.f32.mxu1 %vm632_vm2, %v1291_v3  ;;  %v1294_v63 = vsel %vm1230_vm12, %v3860_v58, %v2572_v19  ;;  %vm1235_vm3 = vcmp.gt.f32.partialorder %v1208_v10, 0.0 }
 0x434   : > { %3213 = vpow2.f32 %v1267_v14  ;;  %v1269_v2 = vmul.f32 1.442695, %v2902_v6  ;;  %v1211_v60 = vpop.f32.mrb[31].mxu0  ;;  %v1292_v38 = vsel %vm1228_vm11, %v1179_v15, %v2570_v54  ;;  %vm1238_vm1 = vcmp.gt.f32.partialorder %v2902_v6, 0.0  ;;  %v3901_v14 = vld [vmem:[%s4424_s7] ss:$0 sm:$0xff] }
 0x435   : > { %3215 = vpow2.f32 %v1263_v29  ;;  %v1265_v27 = vmul.f32 1.442695, %v1211_v60  ;;  %2914 = vmatmul.mubr.msk.f32.gmra.mrb[6].mxu1 %vm632_vm2, %v1292_v38  ;;  %vm1236_vm4 = vcmp.gt.f32.partialorder %v1211_v60, 0.0 }
 0x436   : > { %v3206_v41 = vpop.eup %3205  ;;  %3217 = vpow2.f32 %v1269_v2  ;;  %2916 = vmatprep.mubr.msk.f32.mxu1 %vm632_vm2, %v1293_v20 }
 0x437   : > { %v3208_v57 = vpop.eup %3207  ;;  %3219 = vpow2.f32 %v1265_v27  ;;  %v2575_v15 = vadd.f32 -1.0, %v3206_v41 }
 0x438   : > { %v3210_v18 = vpop.eup %3209  ;;  %v2573_v37 = vadd.f32 -1.0, %v3208_v57 }
 0x439   : > { %v3212_v46 = vpop.eup %3211  ;;  %2917 = vmatmul.mubr.msk.f32.gmra.mrb[8].mxu1 %vm632_vm2, %v1294_v63  ;;  %v2576_v49 = vadd.f32 -1.0, %v3210_v18  ;;  %v1297_v58 = vsel %vm1233_vm15, %v3863_v28, %v2575_v15 }
 0x43a   : > { %v2574_v33 = vadd.f32 -1.0, %v3212_v46  ;;  %v1295_v12 = vsel %vm1231_vm13, %v3866_v32, %v2573_v37 }
 0x43b   : > { %2919 = vmatprep.mubr.msk.f32.mxu1 %vm632_vm2, %v1295_v12  ;;  %v1298_v32 = vsel %vm1234_vm0, %v3869_v39, %v2576_v49 }
 0x43c   : > { %v1296_v40 = vsel %vm1232_vm14, %v1195_v56, %v2574_v33 }
 0x43d   : > { %2920 = vmatmul.mubr.msk.f32.gmra.mrb[10].mxu1 %vm632_vm2, %v1296_v40 }
 0x43e   : > { %v3214_v45 = vpop.eup %3213  ;;  %2922 = vmatprep.mubr.msk.f32.mxu1 %vm632_vm2, %v1297_v58 }
 0x43f   : > { %v3216_v53 = vpop.eup %3215  ;;  %v2579_v52 = vadd.f32 -1.0, %v3214_v45 }
 0x440   : > { %v3218_v61 = vpop.eup %3217  ;;  %v2577_v43 = vadd.f32 -1.0, %v3216_v53 }
 0x441   : > { %v3220_v1 = vpop.eup %3219  ;;  %2923 = vmatmul.mubr.msk.f32.gmra.mrb[12].mxu1 %vm632_vm2, %v1298_v32  ;;  %v2580_v28 = vadd.f32 -1.0, %v3218_v61  ;;  %v1301_v54 = vsel %vm1237_vm5, %v2901_v23, %v2579_v52 }
 0x442   : > { %v2578_v56 = vadd.f32 -1.0, %v3220_v1  ;;  %v1299_v8 = vsel %vm1235_vm3, %v1208_v10, %v2577_v43 }
 0x443   : > { %2925 = vmatprep.mubr.msk.f32.mxu1 %vm632_vm2, %v1299_v8  ;;  %v1302_v39 = vsel %vm1238_vm1, %v2902_v6, %v2580_v28 }
 0x444   : > { %v1300_v9 = vsel %vm1236_vm4, %v1211_v60, %v2578_v56 }
 0x445   : > { %2926 = vmatmul.mubr.msk.f32.gmra.mrb[14].mxu1 %vm632_vm2, %v1300_v9 }
 0x446   : > { %2928 = vmatprep.mubr.msk.f32.mxu1 %vm632_vm2, %v1301_v54 }
 0x449   : > { %2929 = vmatmul.mubr.msk.f32.gmra.mrb[16].mxu1 %vm632_vm2, %v1302_v39 }
 0x500   : > { %v2909_v10 = vpop.f32.mrb[2].mxu1 }
 0x501   : > { %v1507_v3 = vmul.f32 %v2909_v10, %v3901_v14  ;;  %v1421_v29 = vpop.f32.mrb[3].mxu1 }
 0x502   : > { %v1506_v6 = vmul.f32 %v3901_v14, %v1421_v29  ;;  %v3911_v19 = vpack.c.bf16 %v2909_v10, %v1421_v29 }
 0x503   : > { %v1526_v2 = vsel %vm1522_vm6, %v1507_v3, 0.0 }
 0x504   : > { %1527 = vadd.xlane.f32.xlu1 %v1526_v2  ;;  %v2912_v60 = vpop.f32.mrb[4].mxu1  ;;  %3077 = vmatpush3.bf16.xpose.msk.msra.mxu0 %vm3906_vm7, %v3911_v19  ;;  %v1523_v38 = vsel %vm1522_vm6, %v1506_v6, 0.0 }
 0x505   : > { %v1509_v27 = vmul.f32 %v2912_v60, %v3901_v14  ;;  %1524 = vadd.xlane.f32.xlu0 %v1523_v38  ;;  %v1431_v20 = vpop.f32.mrb[5].mxu1  ;;  %3078 = vmatprep.subr.bf16.mxu0 %v3373_v22 }
 0x506   : > { %v1508_v41 = vmul.f32 %v3901_v14, %v1431_v20  ;;  %v3921_v57 = vpack.c.bf16 %v2912_v60, %v1431_v20 }
 0x507   : > { %v1532_v18 = vsel %vm1522_vm6, %v1509_v27, 0.0 }
 0x508   : > { %1533 = vadd.xlane.f32.xlu1 %v1532_v18  ;;  %v2915_v37 = vpop.f32.mrb[6].mxu1  ;;  %v1529_v63 = vsel %vm1522_vm6, %v1508_v41, 0.0 }
 0x509   : > { %v1511_v46 = vmul.f32 %v2915_v37, %v3901_v14  ;;  %1530 = vadd.xlane.f32.xlu0 %v1529_v63  ;;  %v1441_v15 = vpop.f32.mrb[7].mxu1 }
 0x50a   : > { %v1510_v33 = vmul.f32 %v3901_v14, %v1441_v15  ;;  %v3927_v12 = vpack.c.bf16 %v2915_v37, %v1441_v15 }
 0x50b   : > { %v1538_v49 = vsel %vm1522_vm6, %v1511_v46, 0.0 }
 0x50c   : > { %3081 = vmatpush3.bf16.xpose.msk.msra.mxu0 %vm3906_vm7, %v3921_v57  ;;  %1539 = vadd.xlane.f32.xlu1 %v1538_v49  ;;  %v2918_v40 = vpop.f32.mrb[8].mxu1  ;;  %v1535_v58 = vsel %vm1522_vm6, %v1510_v33, 0.0 }
 0x50d   : > { %v1513_v45 = vmul.f32 %v2918_v40, %v3901_v14  ;;  %1536 = vadd.xlane.f32.xlu0 %v1535_v58  ;;  %v1451_v53 = vpop.f32.mrb[9].mxu1  ;;  %3082 = vmatprep.subr.bf16.mxu0 %v3373_v22 }
 0x50e   : > { %v1512_v61 = vmul.f32 %v3901_v14, %v1451_v53  ;;  %v3087_v43 = vpack.c.bf16 %v2918_v40, %v1451_v53 }
 0x50f   : > { %v1544_v32 = vsel %vm1522_vm6, %v1513_v45, 0.0 }
 0x510   : > { %1545 = vadd.xlane.f32.xlu1 %v1544_v32  ;;  %v2921_v1 = vpop.f32.mrb[10].mxu1  ;;  %v1541_v52 = vsel %vm1522_vm6, %v1512_v61, 0.0 }
 0x511   : > { %v1515_v56 = vmul.f32 %v2921_v1, %v3901_v14  ;;  %1542 = vadd.xlane.f32.xlu0 %v1541_v52  ;;  %v1461_v8 = vpop.f32.mrb[11].mxu1 }
 0x512   : > { %v1514_v28 = vmul.f32 %v3901_v14, %v1461_v8  ;;  %v3091_v9 = vpack.c.bf16 %v2921_v1, %v1461_v8 }
 0x513   : > { %v1550_v54 = vsel %vm1522_vm6, %v1515_v56, 0.0 }
 0x514   : > { %3085 = vmatpush3.bf16.xpose.msk.msra.mxu0 %vm3906_vm7, %v3927_v12  ;;  %1551 = vadd.xlane.f32.xlu1 %v1550_v54  ;;  %v2924_v39 = vpop.f32.mrb[12].mxu1  ;;  %v1547_v10 = vsel %vm1522_vm6, %v1514_v28, 0.0 }
 0x515   : > { %v1517_v3 = vmul.f32 %v2924_v39, %v3901_v14  ;;  %1548 = vadd.xlane.f32.xlu0 %v1547_v10  ;;  %v1471_v29 = vpop.f32.mrb[13].mxu1  ;;  %3086 = vmatprep.subr.bf16.mxu0 %v3373_v22 }
 0x516   : > { %v1516_v6 = vmul.f32 %v3901_v14, %v1471_v29  ;;  %v3095_v2 = vpack.c.bf16 %v2924_v39, %v1471_v29 }
 0x517   : > { %v1556_v60 = vsel %vm1522_vm6, %v1517_v3, 0.0  ;;  %v3349_v3 = vld [vmem:[%s3605_s26 + $0x8] sm:$0xff] }
 0x518   : > { %1557 = vadd.xlane.f32.xlu1 %v1556_v60  ;;  %v2927_v38 = vpop.f32.mrb[14].mxu1  ;;  %v1553_v27 = vsel %vm1522_vm6, %v1516_v6, 0.0  ;;  %v3351_v6 = vld [vmem:[%s3605_s26 + $0x18] sm:$0xff]  ;;  %v3352_v60 = vld [vmem:[%s3605_s26 + $0x10] sm:$0xff] }
 0x519   : > { %v1519_v20 = vmul.f32 %v2927_v38, %v3901_v14  ;;  %1554 = vadd.xlane.f32.xlu0 %v1553_v27  ;;  %v1481_v41 = vpop.f32.mrb[15].mxu1 }
 0x51a   : > { %v1518_v18 = vmul.f32 %v3901_v14, %v1481_v41  ;;  %v3099_v37 = vpack.c.bf16 %v2927_v38, %v1481_v41  ;;  %v3353_v41 = vld [vmem:[%s3605_s26 + $0x28] sm:$0xff] }
 0x51b   : > { %v1562_v63 = vsel %vm1522_vm6, %v1519_v20, 0.0 }
 0x51c   : > { %3089 = vmatpush3.bf16.xpose.msk.msra.mxu0 %vm3906_vm7, %v3087_v43  ;;  %1563 = vadd.xlane.f32.xlu1 %v1562_v63  ;;  %v2930_v46 = vpop.f32.mrb[16].mxu1  ;;  %v1559_v15 = vsel %vm1522_vm6, %v1518_v18, 0.0 }
 0x51d   : > { %v1521_v33 = vmul.f32 %v2930_v46, %v3901_v14  ;;  %1560 = vadd.xlane.f32.xlu0 %v1559_v15  ;;  %v1491_v49 = vpop.f32.mrb[17].mxu1  ;;  %3090 = vmatprep.subr.bf16.mxu0 %v3373_v22 }
 0x51e   : > { %v1520_v40 = vmul.f32 %v3901_v14, %v1491_v49  ;;  %v3103_v58 = vpack.c.bf16 %v2930_v46, %v1491_v49  ;;  %v1306_v14 = vld [vmem:[%s4425_s8] sm:$0x1] }
 0x51f   : > { %v1568_v45 = vsel %vm1522_vm6, %v1521_v33, 0.0  ;;  %v3354_v46 = vld [vmem:[%s3605_s26 + $0x20] sm:$0xff] }
 0x520   : > { %1569 = vadd.xlane.f32.xlu1 %v1568_v45  ;;  %v1565_v53 = vsel %vm1522_vm6, %v1520_v40, 0.0 }
 0x521   : > { %1566 = vadd.xlane.f32.xlu0 %v1565_v53 }
 0x524   : > { %3093 = vmatpush3.bf16.xpose.msk.msra.mxu0 %vm3906_vm7, %v3091_v9 }
 0x525   : > { %3094 = vmatprep.subr.bf16.mxu0 %v3373_v22 }
 0x52c   : > { %3097 = vmatpush3.bf16.xpose.msk.msra.mxu0 %vm3906_vm7, %v3095_v2 }
 0x52d   : > { %3098 = vmatprep.subr.bf16.mxu0 %v3373_v22 }
 0x534   : > { %3101 = vmatpush3.bf16.xpose.msk.msra.mxu0 %vm3906_vm7, %v3099_v37 }
 0x535   : > { %3102 = vmatprep.subr.bf16.mxu0 %v3373_v22 }
 0x53c   : > { %3105 = vmatpush3.bf16.xpose.msk.msra.mxu0 %vm3906_vm7, %v3103_v58 }
 0x53d   : > { %2966 = vmatprep.subr.bf16.mxu0 %v3911_v19 }
 0x543   : > { %2964 = vmatmul.mubr.msk.f32.vlgmr.msra.gmra.mrb[32].mxu0 %vm1522_vm6, %v1306_v14 }
 0x544   : > { %2967 = vmatpush3.bf16.msra.mxu0 %v3911_v19 }
 0x545   : > { %2968 = vmatprep.subr.bf16.mxu0 %v3921_v57 }
 0x548   : > { %2969 = vmatpush3.bf16.msra.mxu0 %v3921_v57 }
 0x549   : > { %2970 = vmatprep.subr.bf16.mxu0 %v3927_v12 }
 0x54c   : > { %2971 = vmatpush3.bf16.msra.mxu0 %v3927_v12 }
 0x54d   : > { %2972 = vmatprep.subr.bf16.mxu0 %v3087_v43 }
 0x550   : > { %2973 = vmatpush3.bf16.msra.mxu0 %v3087_v43 }
 0x551   : > { %2974 = vmatprep.subr.bf16.mxu0 %v3091_v9 }
 0x554   : > { %2975 = vmatpush3.bf16.msra.mxu0 %v3091_v9 }
 0x555   : > { %2976 = vmatprep.subr.bf16.mxu0 %v3095_v2 }
 0x558   : > { %2977 = vmatpush3.bf16.msra.mxu0 %v3095_v2 }
 0x559   : > { %2978 = vmatprep.subr.bf16.mxu0 %v3099_v37 }
 0x55c   : > { %2979 = vmatpush3.bf16.msra.mxu0 %v3099_v37 }
 0x55d   : > { %2980 = vmatprep.subr.bf16.mxu0 %v3103_v58 }
 0x560   : > { %2981 = vmatpush3.bf16.msra.mxu0 %v3103_v58 }
 0x591   : > { %v1528_v22 = vpop.xlane.xlu1 %1527 }
 0x592   : > { %v1525_v23 = vpop.xlane.xlu0 %1524 }
 0x595   : > { %v1534_v19 = vpop.xlane.xlu1 %1533 }
 0x596   : > { %v1531_v61 = vpop.xlane.xlu0 %1530 }
 0x599   : > { %v1540_v57 = vpop.xlane.xlu1 %1539 }
 0x59a   : > { %v1537_v32 = vpop.xlane.xlu0 %1536 }
 0x59d   : > { %v1546_v12 = vpop.xlane.xlu1 %1545 }
 0x59e   : > { %v1543_v1 = vpop.xlane.xlu0 %1542 }
 0x5a1   : > { %v1552_v27 = vpop.xlane.xlu1 %1551 }
 0x5a2   : > { %v1549_v20 = vpop.xlane.xlu0 %1548 }
 0x616   : > { %v1688_v43 = vpop.f32.mrb[32].mxu0 }
 0x617   : > { %v3985_v52 = vrot.slane %v1688_v43, %v804_v25  ;;  %v2965_v56 = vpop.f32.mrb[33].mxu0 }
 0x619   : > { %v1697_v8 = vadd.f32 %v3985_v52, %v1528_v22  ;;  %v1696_v28 = vadd.f32 %v3985_v52, %v1525_v23  ;;  %v1699_v9 = vadd.f32 %v3985_v52, %v1534_v19  ;;  %v1698_v54 = vadd.f32 %v3985_v52, %v1531_v61  ;;  %v1558_v22 = vpop.xlane.xlu1 %1557  ;;  %v1555_v23 = vpop.xlane.xlu0 %1554  ;;  %v3355_v19 = vld [vmem:[%s3605_s26 + $0x38] sm:$0xff] }
 0x61a   : > { %v1701_v39 = vadd.f32 %v3985_v52, %v1540_v57  ;;  %v1700_v10 = vadd.f32 %v3985_v52, %v1537_v32  ;;  %v1703_v33 = vadd.f32 %v3985_v52, %v1546_v12  ;;  %v1702_v49 = vadd.f32 %v3985_v52, %v1543_v1  ;;  %v3356_v57 = vld [vmem:[%s3605_s26 + $0x30] sm:$0xff] }
 0x61b   : > { %v1713_v29 = vmul.f32 %v3349_v3, %v1697_v8  ;;  %v1712_v25 = vmul.f32 %v3350_v24, %v1696_v28  ;;  %v1715_v2 = vmul.f32 %v3351_v6, %v1699_v9  ;;  %v1714_v38 = vmul.f32 %v3352_v60, %v1698_v54  ;;  %v3357_v54 = vld [vmem:[%s3605_s26 + $0x48] sm:$0xff] }
 0x61c   : > { %v1717_v18 = vmul.f32 %v3353_v41, %v1701_v39  ;;  %v1716_v15 = vmul.f32 %v3354_v46, %v1700_v10  ;;  %v1719_v61 = vmul.f32 %v3355_v19, %v1703_v33  ;;  %v1718_v32 = vmul.f32 %v3356_v57, %v1702_v49  ;;  %v3359_v41 = vld [vmem:[%s3605_s26 + $0x58] sm:$0xff]  ;;  %v3361_v49 = vld [vmem:[%s3605_s26 + $0x68] sm:$0xff]  ;;  %v3362_v57 = vld [vmem:[%s3605_s26 + $0x60] sm:$0xff] }
 0x61d   : > { %vm1729_vm2 = vcmp.gt.f32.partialorder %v1713_v29, 0.0  ;;  %v1745_v37 = vmul.f32 0.2, %v1713_v29  ;;  %vm1728_vm8 = vcmp.gt.f32.partialorder %v1712_v25, 0.0  ;;  %v1744_v63 = vmul.f32 0.2, %v1712_v25  ;;  %v1561_v60 = vpop.xlane.xlu0 %1560 }
 0x61e   : > { %v1747_v45 = vmul.f32 0.2, %v1715_v2  ;;  %v1746_v53 = vmul.f32 0.2, %v1714_v38  ;;  %vm1731_vm9 = vcmp.gt.f32.partialorder %v1715_v2, 0.0  ;;  %vm1730_vm10 = vcmp.gt.f32.partialorder %v1714_v38, 0.0 }
 0x61f   : > { %v4001_v40 = vsel %vm1729_vm2, %v1713_v29, %v1745_v37  ;;  %v4003_v58 = vsel %vm1728_vm8, %v1712_v25, %v1744_v63  ;;  %v1749_v14 = vmul.f32 0.2, %v1717_v18  ;;  %vm1733_vm11 = vcmp.gt.f32.partialorder %v1717_v18, 0.0  ;;  %v3358_v25 = vld [vmem:[%s3605_s26 + $0x40] sm:$0xff]  ;;  %v3360_v37 = vld [vmem:[%s3605_s26 + $0x50] sm:$0xff] }
 0x620   : > { %1778 = vmax.xlane.f32.xlu1 %v4001_v40  ;;  %1776 = vmax.xlane.f32.xlu0 %v4003_v58  ;;  %v1705_v12 = vadd.f32 %v3985_v52, %v1552_v27  ;;  %v4010_v1 = vsel %vm1731_vm9, %v1715_v2, %v1747_v45  ;;  %v4012_v43 = vsel %vm1730_vm10, %v1714_v38, %v1746_v53  ;;  %v1748_v56 = vmul.f32 0.2, %v1716_v15  ;;  %v1564_v2 = vpop.xlane.xlu1 %1563 }
 0x621   : > { %v1704_v8 = vadd.f32 %v3985_v52, %v1549_v20  ;;  %vm1732_vm12 = vcmp.gt.f32.partialorder %v1716_v15, 0.0  ;;  %v4017_v28 = vsel %vm1733_vm11, %v1717_v18, %v1749_v14  ;;  %v1751_v9 = vmul.f32 0.2, %v1719_v61  ;;  %v1567_v14 = vpop.xlane.xlu0 %1566 }
 0x622   : > { %v1721_v39 = vmul.f32 %v3357_v54, %v1705_v12  ;;  %v1707_v10 = vadd.f32 %v3985_v52, %v1558_v22  ;;  %v1706_v3 = vadd.f32 %v3985_v52, %v1555_v23  ;;  %v4022_v29 = vsel %vm1732_vm12, %v1716_v15, %v1748_v56 }
 0x623   : > { %vm1735_vm13 = vcmp.gt.f32.partialorder %v1719_v61, 0.0  ;;  %v1750_v24 = vmul.f32 0.2, %v1718_v32  ;;  %v1720_v6 = vmul.f32 %v3358_v25, %v1704_v8  ;;  %vm1734_vm14 = vcmp.gt.f32.partialorder %v1718_v32, 0.0 }
 0x624   : > { %1782 = vmax.xlane.f32.xlu1 %v4010_v1  ;;  %1780 = vmax.xlane.f32.xlu0 %v4012_v43  ;;  %v1709_v38 = vadd.f32 %v3985_v52, %v1564_v2  ;;  %v4028_v27 = vsel %vm1735_vm13, %v1719_v61, %v1751_v9  ;;  %v1753_v20 = vmul.f32 0.2, %v1721_v39  ;;  %v1723_v18 = vmul.f32 %v3359_v41, %v1707_v10  ;;  %v1570_v53 = vpop.xlane.xlu1 %1569  ;;  %v3363_v10 = vld [vmem:[%s3605_s26 + $0x78] sm:$0xff] }
 0x625   : > { %v1722_v63 = vmul.f32 %v3360_v37, %v1706_v3  ;;  %v4032_v46 = vsel %vm1734_vm14, %v1718_v32, %v1750_v24  ;;  %vm1737_vm15 = vcmp.gt.f32.partialorder %v1721_v39, 0.0  ;;  %v1752_v15 = vmul.f32 0.2, %v1720_v6  ;;  %v3364_v24 = vld [vmem:[%s3605_s26 + $0x70] sm:$0xff]  ;;  %s4396_s26 = scalar_lea.vmem %s4426_s9, %s3598_s23 }
 0x626   : > { %v1708_v33 = vadd.f32 %v3985_v52, %v1561_v60  ;;  %vm1736_vm0 = vcmp.gt.f32.partialorder %v1720_v6, 0.0  ;;  %v1725_v45 = vmul.f32 %v3361_v49, %v1709_v38  ;;  %v4038_v22 = vsel %vm1737_vm15, %v1721_v39, %v1753_v20 }
 0x627   : > { %vm1739_vm3 = vcmp.gt.f32.partialorder %v1723_v18, 0.0  ;;  %v1755_v23 = vmul.f32 0.2, %v1723_v18  ;;  %v1754_v19 = vmul.f32 0.2, %v1722_v63  ;;  %v4040_v61 = vsel %vm1736_vm0, %v1720_v6, %v1752_v15 }
 0x628   : > { %1786 = vmax.xlane.f32.xlu1 %v4017_v28  ;;  %1784 = vmax.xlane.f32.xlu0 %v4022_v29  ;;  %v1724_v32 = vmul.f32 %v3362_v57, %v1708_v33  ;;  %v1711_v12 = vadd.f32 %v3985_v52, %v1570_v53  ;;  %v1710_v56 = vadd.f32 %v3985_v52, %v1567_v14  ;;  %vm1738_vm4 = vcmp.gt.f32.partialorder %v1722_v63, 0.0 }
 0x629   : > { %v4047_v8 = vsel %vm1739_vm3, %v1723_v18, %v1755_v23  ;;  %v1757_v9 = vmul.f32 0.2, %v1725_v45  ;;  %v4049_v54 = vsel %vm1738_vm4, %v1722_v63, %v1754_v19  ;;  %vm1741_vm5 = vcmp.gt.f32.partialorder %v1725_v45, 0.0 }
 0x62a   : > { %v1756_v39 = vmul.f32 0.2, %v1724_v32  ;;  %v1727_v3 = vmul.f32 %v3363_v10, %v1711_v12  ;;  %v1726_v25 = vmul.f32 %v3364_v24, %v1710_v56  ;;  %vm1740_vm1 = vcmp.gt.f32.partialorder %v1724_v32, 0.0 }
 0x62b   : > { %v4055_v52 = vsel %vm1741_vm5, %v1725_v45, %v1757_v9 }
 0x62c   : > { %1790 = vmax.xlane.f32.xlu1 %v4028_v27  ;;  %1788 = vmax.xlane.f32.xlu0 %v4032_v46  ;;  %v4057_v6 = vsel %vm1740_vm1, %v1724_v32, %v1756_v39  ;;  %v1759_v2 = vmul.f32 0.2, %v1727_v3  ;;  %v1758_v60 = vmul.f32 0.2, %v1726_v25  ;;  %vm1743_vm7 = vcmp.gt.f32.partialorder %v1727_v3, 0.0 }
 0x62d   : > { %vm1742_vm2 = vcmp.gt.f32.partialorder %v1726_v25, 0.0 }
 0x62e   : > { %v4061_v38 = vsel %vm1743_vm7, %v1727_v3, %v1759_v2  ;;  %v4063_v20 = vsel %vm1742_vm2, %v1726_v25, %v1758_v60 }
 0x630   : > { %1794 = vmax.xlane.f32.xlu1 %v4038_v22  ;;  %1792 = vmax.xlane.f32.xlu0 %v4040_v61 }
 0x634   : > { %1798 = vmax.xlane.f32.xlu1 %v4047_v8  ;;  %1796 = vmax.xlane.f32.xlu0 %v4049_v54 }
 0x638   : > { %1802 = vmax.xlane.f32.xlu1 %v4055_v52  ;;  %1800 = vmax.xlane.f32.xlu0 %v4057_v6 }
 0x63c   : > { %1806 = vmax.xlane.f32.xlu1 %v4061_v38  ;;  %1804 = vmax.xlane.f32.xlu0 %v4063_v20 }
 0x6ad   : > { %v1779_v41 = vpop.xlane.xlu1 %1778  ;;  %v1777_v18 = vpop.xlane.xlu0 %1776 }
 0x6ae   : > { %v1809_v37 = vsub.f32 %v4001_v40, %v1779_v41  ;;  %v1808_v63 = vsub.f32 %v4003_v58, %v1777_v18 }
 0x6b0   : > { %v1826_v15 = vmul.f32 1.442695, %v1809_v37  ;;  %v1824_v33 = vmul.f32 1.442695, %v1808_v63 }
 0x6b1   : > { %v1783_v49 = vpop.xlane.xlu1 %1782  ;;  %v1781_v45 = vpop.xlane.xlu0 %1780 }
 0x6b2   : > { %3221 = vpow2.f32 %v1826_v15  ;;  %v1811_v53 = vsub.f32 %v4010_v1, %v1783_v49  ;;  %v1810_v14 = vsub.f32 %v4012_v43, %v1781_v45 }
 0x6b3   : > { %3223 = vpow2.f32 %v1824_v33 }
 0x6b4   : > { %v1830_v23 = vmul.f32 1.442695, %v1811_v53  ;;  %v1828_v19 = vmul.f32 1.442695, %v1810_v14 }
 0x6b5   : > { %v1787_v57 = vpop.xlane.xlu1 %1786  ;;  %v1785_v32 = vpop.xlane.xlu0 %1784 }
 0x6b6   : > { %3225 = vpow2.f32 %v1830_v23  ;;  %v1813_v12 = vsub.f32 %v4017_v28, %v1787_v57  ;;  %v1812_v40 = vsub.f32 %v4022_v29, %v1785_v32 }
 0x6b7   : > { %3227 = vpow2.f32 %v1828_v19 }
 0x6b8   : > { %v1834_v58 = vmul.f32 1.442695, %v1813_v12  ;;  %v1832_v56 = vmul.f32 1.442695, %v1812_v40 }
 0x6b9   : > { %v1791_v9 = vpop.xlane.xlu1 %1790  ;;  %v1789_v39 = vpop.xlane.xlu0 %1788 }
 0x6ba   : > { %3229 = vpow2.f32 %v1834_v58  ;;  %v1815_v1 = vsub.f32 %v4028_v27, %v1791_v9  ;;  %v1814_v43 = vsub.f32 %v4032_v46, %v1789_v39 }
 0x6bb   : > { %3231 = vpow2.f32 %v1832_v56 }
 0x6bc   : > { %v3222_v10 = vpop.eup %3221  ;;  %v1838_v3 = vmul.f32 1.442695, %v1815_v1  ;;  %v1836_v24 = vmul.f32 1.442695, %v1814_v43 }
 0x6bd   : > { %v3224_v25 = vpop.eup %3223  ;;  %v1795_v2 = vpop.xlane.xlu1 %1794  ;;  %v4077_v28 = vmul.f32 %v3222_v10, %v2648_v26 }
 0x6be   : > { %v1793_v60 = vpop.xlane.xlu0 %1792  ;;  %3233 = vpow2.f32 %v1838_v3  ;;  %v1817_v29 = vsub.f32 %v4038_v22, %v1795_v2  ;;  %v4083_v27 = vmul.f32 %v3224_v25, %v2647_v30 }
 0x6bf   : > { %v1816_v41 = vsub.f32 %v4040_v61, %v1793_v60  ;;  %3235 = vpow2.f32 %v1836_v24  ;;  %1874 = vadd.xlane.f32.xlu1 %v4077_v28 }
 0x6c0   : > { %v3226_v46 = vpop.eup %3225  ;;  %v1842_v18 = vmul.f32 1.442695, %v1817_v29  ;;  %1872 = vadd.xlane.f32.xlu0 %v4083_v27 }
 0x6c1   : > { %v1840_v37 = vmul.f32 1.442695, %v1816_v41  ;;  %v3228_v63 = vpop.eup %3227  ;;  %v1799_v26 = vpop.xlane.xlu1 %1798  ;;  %v4089_v22 = vmul.f32 %v3226_v46, %v2652_v31 }
 0x6c2   : > { %v1797_v15 = vpop.xlane.xlu0 %1796  ;;  %3237 = vpow2.f32 %v1842_v18  ;;  %v1819_v5 = vsub.f32 %v4047_v8, %v1799_v26  ;;  %v4095_v61 = vmul.f32 %v3228_v63, %v2651_v36 }
 0x6c3   : > { %v1818_v30 = vsub.f32 %v4049_v54, %v1797_v15  ;;  %3239 = vpow2.f32 %v1840_v37  ;;  %1878 = vadd.xlane.f32.xlu1 %v4089_v22 }
 0x6c4   : > { %v3230_v33 = vpop.eup %3229  ;;  %v1846_v49 = vmul.f32 1.442695, %v1819_v5  ;;  %1876 = vadd.xlane.f32.xlu0 %v4095_v61 }
 0x6c5   : > { %v1844_v45 = vmul.f32 1.442695, %v1818_v30  ;;  %v3232_v53 = vpop.eup %3231  ;;  %v1803_v31 = vpop.xlane.xlu1 %1802  ;;  %v4101_v8 = vmul.f32 %v3230_v33, %v2656_v50 }
 0x6c6   : > { %v1801_v14 = vpop.xlane.xlu0 %1800  ;;  %3241 = vpow2.f32 %v1846_v49  ;;  %v1821_v13 = vsub.f32 %v4055_v52, %v1803_v31  ;;  %v4107_v54 = vmul.f32 %v3232_v53, %v2655_v51 }
 0x6c7   : > { %v1820_v36 = vsub.f32 %v4057_v6, %v1801_v14  ;;  %3243 = vpow2.f32 %v1844_v45  ;;  %1882 = vadd.xlane.f32.xlu1 %v4101_v8 }
 0x6c8   : > { %v3234_v23 = vpop.eup %3233  ;;  %v1850_v19 = vmul.f32 1.442695, %v1821_v13  ;;  %1880 = vadd.xlane.f32.xlu0 %v4107_v54 }
 0x6c9   : > { %v1848_v57 = vmul.f32 1.442695, %v1820_v36  ;;  %v3236_v32 = vpop.eup %3235  ;;  %v1807_v50 = vpop.xlane.xlu1 %1806  ;;  %v4113_v52 = vmul.f32 %v3234_v23, %v2660_v4 }
 0x6ca   : > { %v1805_v12 = vpop.xlane.xlu0 %1804  ;;  %3245 = vpow2.f32 %v1850_v19  ;;  %v1823_v42 = vsub.f32 %v4061_v38, %v1807_v50  ;;  %v4119_v6 = vmul.f32 %v3236_v32, %v2659_v7 }
 0x6cb   : > { %v1822_v51 = vsub.f32 %v4063_v20, %v1805_v12  ;;  %3247 = vpow2.f32 %v1848_v57  ;;  %1886 = vadd.xlane.f32.xlu1 %v4113_v52 }
 0x6cc   : > { %v3238_v40 = vpop.eup %3237  ;;  %v1854_v58 = vmul.f32 1.442695, %v1823_v42  ;;  %1884 = vadd.xlane.f32.xlu0 %v4119_v6 }
 0x6cd   : > { %v1852_v56 = vmul.f32 1.442695, %v1822_v51  ;;  %v3240_v9 = vpop.eup %3239  ;;  %v4125_v4 = vmul.f32 %v3238_v40, %v2664_v16 }
 0x6ce   : > { %3249 = vpow2.f32 %v1854_v58  ;;  %v4129_v38 = vmul.f32 %v3240_v9, %v2663_v17 }
 0x6cf   : > { %3251 = vpow2.f32 %v1852_v56  ;;  %1890 = vadd.xlane.f32.xlu1 %v4125_v4 }
 0x6d0   : > { %v3242_v59 = vpop.eup %3241  ;;  %1888 = vadd.xlane.f32.xlu0 %v4129_v38 }
 0x6d1   : > { %v3244_v7 = vpop.eup %3243  ;;  %v4135_v20 = vmul.f32 %v3242_v59, %v2668_v0 }
 0x6d2   : > { %v4139_v16 = vmul.f32 %v3244_v7, %v2667_v34 }
 0x6d3   : > { %1894 = vadd.xlane.f32.xlu1 %v4135_v20 }
 0x6d4   : > { %v3246_v11 = vpop.eup %3245  ;;  %1892 = vadd.xlane.f32.xlu0 %v4139_v16 }
 0x6d5   : > { %v3248_v17 = vpop.eup %3247  ;;  %v4145_v39 = vmul.f32 %v3246_v11, %v2672_v44 }
 0x6d6   : > { %v4149_v1 = vmul.f32 %v3248_v17, %v2671_v47 }
 0x6d7   : > { %1898 = vadd.xlane.f32.xlu1 %v4145_v39 }
 0x6d8   : > { %v3250_v0 = vpop.eup %3249  ;;  %1896 = vadd.xlane.f32.xlu0 %v4149_v1 }
 0x6d9   : > { %v3252_v21 = vpop.eup %3251  ;;  %v4155_v34 = vmul.f32 %v3250_v0, %v2676_v55 }
 0x6da   : > { %v4159_v43 = vmul.f32 %v3252_v21, %v2675_v62 }
 0x6db   : > { %1902 = vadd.xlane.f32.xlu1 %v4155_v34 }
 0x6dc   : > { %1900 = vadd.xlane.f32.xlu0 %v4159_v43 }
 0x74c   : > { %v1875_v35 = vpop.xlane.xlu1 %1874 }
 0x74d   : > { %v1905_v44 = vmax.f32 %v1875_v35, 1e-30  ;;  %v1873_v47 = vpop.xlane.xlu0 %1872 }
 0x74e   : > { %v1904_v10 = vmax.f32 %v1873_v47, 1e-30 }
 0x74f   : > { %3253 = vrcp.f32 %v1905_v44 }
 0x750   : > { %3255 = vrcp.f32 %v1904_v10  ;;  %v1879_v3 = vpop.xlane.xlu1 %1878 }
 0x751   : > { %v1907_v24 = vmax.f32 %v1879_v3, 1e-30  ;;  %v1877_v25 = vpop.xlane.xlu0 %1876 }
 0x752   : > { %v1906_v2 = vmax.f32 %v1877_v25, 1e-30 }
 0x753   : > { %3257 = vrcp.f32 %v1907_v24 }
 0x754   : > { %3259 = vrcp.f32 %v1906_v2  ;;  %v1883_v55 = vpop.xlane.xlu1 %1882 }
 0x755   : > { %v1909_v48 = vmax.f32 %v1883_v55, 1e-30  ;;  %v1881_v62 = vpop.xlane.xlu0 %1880 }
 0x756   : > { %v1908_v60 = vmax.f32 %v1881_v62, 1e-30 }
 0x757   : > { %3261 = vrcp.f32 %v1909_v48 }
 0x758   : > { %3263 = vrcp.f32 %v1908_v60  ;;  %v1887_v29 = vpop.xlane.xlu1 %1886 }
 0x759   : > { %v3254_v41 = vpop.eup %3253  ;;  %v1911_v46 = vmax.f32 %v1887_v29, 1e-30  ;;  %v1885_v18 = vpop.xlane.xlu0 %1884 }
 0x75a   : > { %v3256_v37 = vpop.eup %3255  ;;  %v1910_v63 = vmax.f32 %v1885_v18, 1e-30  ;;  %v1937_v26 = vmul.f32 %v3254_v41, %v4077_v28 }
 0x75b   : > { %3265 = vrcp.f32 %v1911_v46  ;;  %v1936_v15 = vmul.f32 %v3256_v37, %v4083_v27 }
 0x75c   : > { %3267 = vrcp.f32 %v1910_v63  ;;  %v1891_v5 = vpop.xlane.xlu1 %1890 }
 0x75d   : > { %v3258_v30 = vpop.eup %3257  ;;  %v1913_v33 = vmax.f32 %v1891_v5, 1e-30  ;;  %v1889_v49 = vpop.xlane.xlu0 %1888  ;;  %v1952_v45 = vpack.c.bf16 %v1937_v26, %v1936_v15 }
 0x75e   : > { %v3260_v53 = vpop.eup %3259  ;;  %v1912_v31 = vmax.f32 %v1889_v49, 1e-30  ;;  %v1939_v14 = vmul.f32 %v3258_v30, %v4089_v22 }
 0x75f   : > { %3269 = vrcp.f32 %v1913_v33  ;;  %2982 = vmatprep.mubr.bf16.mxu0 %v1952_v45  ;;  %v1938_v13 = vmul.f32 %v3260_v53, %v4095_v61 }
 0x760   : > { %3271 = vrcp.f32 %v1912_v31  ;;  %v1895_v36 = vpop.xlane.xlu1 %1894 }
 0x761   : > { %v3262_v28 = vpop.eup %3261  ;;  %v1915_v23 = vmax.f32 %v1895_v36, 1e-30  ;;  %v1893_v19 = vpop.xlane.xlu0 %1892  ;;  %v1953_v27 = vpack.c.bf16 %v1939_v14, %v1938_v13 }
 0x762   : > { %v3264_v57 = vpop.eup %3263  ;;  %v1914_v32 = vmax.f32 %v1893_v19, 1e-30  ;;  %v1941_v50 = vmul.f32 %v3262_v28, %v4101_v8 }
 0x763   : > { %3273 = vrcp.f32 %v1915_v23  ;;  %2983 = vmatmul.mubr.bf16.vlgmr.msra.gmra.mrb[36].mxu0 %v1953_v27  ;;  %v1940_v12 = vmul.f32 %v3264_v57, %v4107_v54 }
 0x764   : > { %3275 = vrcp.f32 %v1914_v32  ;;  %v1899_v22 = vpop.xlane.xlu1 %1898 }
 0x765   : > { %v3266_v42 = vpop.eup %3265  ;;  %v1917_v51 = vmax.f32 %v1899_v22, 1e-30  ;;  %v1897_v40 = vpop.xlane.xlu0 %1896  ;;  %v1954_v61 = vpack.c.bf16 %v1941_v50, %v1940_v12 }
 0x766   : > { %v3268_v58 = vpop.eup %3267  ;;  %v1916_v56 = vmax.f32 %v1897_v40, 1e-30  ;;  %v1943_v9 = vmul.f32 %v3266_v42, %v4113_v52 }
 0x767   : > { %3277 = vrcp.f32 %v1917_v51  ;;  %2986 = vmatprep.mubr.bf16.mxu0 %v1954_v61  ;;  %v1942_v59 = vmul.f32 %v3268_v58, %v4119_v6 }
 0x768   : > { %3279 = vrcp.f32 %v1916_v56  ;;  %v1903_v8 = vpop.xlane.xlu1 %1902 }
 0x769   : > { %v3270_v7 = vpop.eup %3269  ;;  %v1919_v11 = vmax.f32 %v1903_v8, 1e-30  ;;  %v1901_v17 = vpop.xlane.xlu0 %1900  ;;  %v1955_v54 = vpack.c.bf16 %v1943_v9, %v1942_v59 }
 0x76a   : > { %v3272_v0 = vpop.eup %3271  ;;  %v1918_v21 = vmax.f32 %v1901_v17, 1e-30  ;;  %v1945_v35 = vmul.f32 %v3270_v7, %v4125_v4 }
 0x76b   : > { %3281 = vrcp.f32 %v1919_v11  ;;  %2987 = vmatmul.mubr.bf16.gmra.mrb[40].mxu0 %v1955_v54  ;;  %v1944_v44 = vmul.f32 %v3272_v0, %v4129_v38 }
 0x76c   : > { %3283 = vrcp.f32 %v1918_v21 }
 0x76d   : > { %v3274_v52 = vpop.eup %3273  ;;  %v1956_v47 = vpack.c.bf16 %v1945_v35, %v1944_v44 }
 0x76e   : > { %v3276_v10 = vpop.eup %3275  ;;  %v1947_v6 = vmul.f32 %v3274_v52, %v4135_v20 }
 0x76f   : > { %2990 = vmatprep.mubr.bf16.mxu0 %v1956_v47  ;;  %v1946_v3 = vmul.f32 %v3276_v10, %v4139_v16 }
 0x771   : > { %v3278_v24 = vpop.eup %3277  ;;  %v1957_v25 = vpack.c.bf16 %v1947_v6, %v1946_v3 }
 0x772   : > { %v3280_v2 = vpop.eup %3279  ;;  %v1949_v55 = vmul.f32 %v3278_v24, %v4145_v39 }
 0x773   : > { %2991 = vmatmul.mubr.bf16.gmra.mrb[44].mxu0 %v1957_v25  ;;  %v1948_v4 = vmul.f32 %v3280_v2, %v4149_v1 }
 0x775   : > { %v3282_v48 = vpop.eup %3281  ;;  %v1958_v62 = vpack.c.bf16 %v1949_v55, %v1948_v4 }
 0x776   : > { %v3284_v38 = vpop.eup %3283  ;;  %v1951_v60 = vmul.f32 %v3282_v48, %v4155_v34 }
 0x777   : > { %2994 = vmatprep.mubr.bf16.mxu0 %v1958_v62  ;;  %v1950_v29 = vmul.f32 %v3284_v38, %v4159_v43 }
 0x779   : > { %v1959_v20 = vpack.c.bf16 %v1951_v60, %v1950_v29 }
 0x77b   : > { %2995 = vmatmul.mubr.bf16.gmra.mrb[48].mxu0 %v1959_v20 }
 0x836   : > { %v2984_v41 = vpop.f32.mrb[36].mxu0 }
 0x837   : > { %v2085_v16 = vmul.f32 1.442695, %v2984_v41  ;;  %v2002_v46 = vpop.f32.mrb[37].mxu0  ;;  %vm2067_vm9 = vcmp.gt.f32.partialorder %v2984_v41, 0.0 }
 0x838   : > { %v2081_v18 = vmul.f32 1.442695, %v2002_v46  ;;  %v2985_v37 = vpop.f32.mrb[38].mxu0  ;;  %vm2065_vm8 = vcmp.gt.f32.partialorder %v2002_v46, 0.0 }
 0x839   : > { %3285 = vpow2.f32 %v2085_v16  ;;  %v2087_v39 = vmul.f32 1.442695, %v2985_v37  ;;  %v2005_v63 = vpop.f32.mrb[39].mxu0  ;;  %vm2068_vm11 = vcmp.gt.f32.partialorder %v2985_v37, 0.0 }
 0x83a   : > { %3287 = vpow2.f32 %v2081_v18  ;;  %v2083_v1 = vmul.f32 1.442695, %v2005_v63  ;;  %vm2066_vm10 = vcmp.gt.f32.partialorder %v2005_v63, 0.0 }
 0x83b   : > { %3289 = vpow2.f32 %v2087_v39 }
 0x83c   : > { %3291 = vpow2.f32 %v2083_v1 }
 0x83e   : > { %v4179_v26 = vpop.f32.mrb[40].mxu0 }
 0x83f   : > { %v2093_v34 = vmul.f32 1.442695, %v4179_v26  ;;  %v2018_v15 = vpop.f32.mrb[41].mxu0  ;;  %vm2071_vm12 = vcmp.gt.f32.partialorder %v4179_v26, 0.0 }
 0x840   : > { %v2089_v43 = vmul.f32 1.442695, %v2018_v15  ;;  %v4182_v5 = vpop.f32.mrb[42].mxu0  ;;  %vm2069_vm13 = vcmp.gt.f32.partialorder %v2018_v15, 0.0 }
 0x841   : > { %3293 = vpow2.f32 %v2093_v34  ;;  %v2095_v30 = vmul.f32 1.442695, %v4182_v5  ;;  %v4185_v33 = vpop.f32.mrb[43].mxu0  ;;  %vm2072_vm14 = vcmp.gt.f32.partialorder %v4182_v5, 0.0 }
 0x842   : > { %3295 = vpow2.f32 %v2089_v43  ;;  %v2091_v49 = vmul.f32 1.442695, %v4185_v33  ;;  %vm2070_vm15 = vcmp.gt.f32.partialorder %v4185_v33, 0.0 }
 0x843   : > { %v3286_v45 = vpop.eup %3285  ;;  %3297 = vpow2.f32 %v2095_v30 }
 0x844   : > { %v3288_v53 = vpop.eup %3287  ;;  %v2617_v31 = vadd.f32 -1.0, %v3286_v45  ;;  %3299 = vpow2.f32 %v2091_v49 }
 0x845   : > { %v3290_v14 = vpop.eup %3289  ;;  %v2615_v13 = vadd.f32 -1.0, %v3288_v53 }
 0x846   : > { %v3292_v36 = vpop.eup %3291  ;;  %v2618_v28 = vadd.f32 -1.0, %v3290_v14  ;;  %v4188_v23 = vpop.f32.mrb[44].mxu0  ;;  %v4195_v50 = vsel %vm2067_vm9, %v2984_v41, %v2617_v31 }
 0x847   : > { %v2616_v19 = vadd.f32 -1.0, %v3292_v36  ;;  %v2101_v27 = vmul.f32 1.442695, %v4188_v23  ;;  %v4191_v57 = vpop.f32.mrb[45].mxu0  ;;  %v4193_v32 = vsel %vm2065_vm8, %v2002_v46, %v2615_v13  ;;  %v2147_v7 = vmul.f32 %v4195_v50, %v4195_v50 }
 0x848   : > { %v2097_v12 = vmul.f32 1.442695, %v4191_v57  ;;  %v4198_v22 = vpop.f32.mrb[46].mxu0  ;;  %v2145_v42 = vmul.f32 %v4193_v32, %v4193_v32  ;;  %v4207_v58 = vsel %vm2068_vm11, %v2985_v37, %v2618_v28  ;;  %vm2075_vm0 = vcmp.gt.f32.partialorder %v4188_v23, 0.0 }
 0x849   : > { %3301 = vpow2.f32 %v2101_v27  ;;  %v2103_v51 = vmul.f32 1.442695, %v4198_v22  ;;  %v4203_v40 = vpop.f32.mrb[47].mxu0  ;;  %v4205_v61 = vsel %vm2066_vm10, %v2005_v63, %v2616_v19  ;;  %v2148_v35 = vmul.f32 %v4207_v58, %v4207_v58 }
 0x84a   : > { %3303 = vpow2.f32 %v2097_v12  ;;  %v2099_v56 = vmul.f32 1.442695, %v4203_v40  ;;  %v2161_v9 = vsel %vm1522_vm6, %v2145_v42, 0.0  ;;  %v2146_v8 = vmul.f32 %v4205_v61, %v4205_v61 }
 0x84b   : > { %v3294_v59 = vpop.eup %3293  ;;  %3305 = vpow2.f32 %v2103_v51  ;;  %2162 = vadd.xlane.f32.xlu0 %v2161_v9  ;;  %v2167_v10 = vsel %vm1522_vm6, %v2147_v7, 0.0  ;;  %v2170_v60 = vsel %vm1522_vm6, %v2148_v35, 0.0  ;;  %vm2073_vm3 = vcmp.gt.f32.partialorder %v4191_v57, 0.0 }
 0x84c   : > { %v3296_v11 = vpop.eup %3295  ;;  %v2621_v17 = vadd.f32 -1.0, %v3294_v59  ;;  %3307 = vpow2.f32 %v2099_v56  ;;  %v2164_v21 = vsel %vm1522_vm6, %v2146_v8, 0.0  ;;  %vm2074_vm4 = vcmp.gt.f32.partialorder %v4203_v40, 0.0 }
 0x84d   : > { %v3298_v54 = vpop.eup %3297  ;;  %v2619_v0 = vadd.f32 -1.0, %v3296_v11  ;;  %2165 = vadd.xlane.f32.xlu1 %v2164_v21  ;;  %vm2076_vm5 = vcmp.gt.f32.partialorder %v4198_v22, 0.0 }
 0x84e   : > { %v3300_v44 = vpop.eup %3299  ;;  %v2622_v52 = vadd.f32 -1.0, %v3298_v54  ;;  %v4219_v47 = vpop.f32.mrb[48].mxu0  ;;  %v4229_v2 = vsel %vm2071_vm12, %v4179_v26, %v2621_v17 }
 0x84f   : > { %v4222_v6 = vsel %vm2069_vm13, %v2018_v15, %v2619_v0  ;;  %v2620_v3 = vadd.f32 -1.0, %v3300_v44  ;;  %v2109_v24 = vmul.f32 1.442695, %v4219_v47  ;;  %2168 = vadd.xlane.f32.xlu0 %v2167_v10  ;;  %v4226_v25 = vpop.f32.mrb[49].mxu0  ;;  %v2151_v37 = vmul.f32 %v4229_v2, %v4229_v2 }
 0x850   : > { %v2105_v55 = vmul.f32 1.442695, %v4226_v25  ;;  %v4233_v4 = vpop.f32.mrb[50].mxu0  ;;  %v2149_v48 = vmul.f32 %v4222_v6, %v4222_v6  ;;  %v4243_v20 = vsel %vm2072_vm14, %v4182_v5, %v2622_v52  ;;  %vm2079_vm1 = vcmp.gt.f32.partialorder %v4219_v47, 0.0 }
 0x851   : > { %v4238_v62 = vsel %vm2070_vm15, %v4185_v33, %v2620_v3  ;;  %3309 = vpow2.f32 %v2109_v24  ;;  %v2111_v38 = vmul.f32 1.442695, %v4233_v4  ;;  %v2053_v29 = vpop.f32.mrb[51].mxu0  ;;  %2171 = vadd.xlane.f32.xlu1 %v2170_v60  ;;  %v2152_v15 = vmul.f32 %v4243_v20, %v4243_v20 }
 0x852   : > { %3311 = vpow2.f32 %v2105_v55  ;;  %v2107_v41 = vmul.f32 1.442695, %v2053_v29  ;;  %v2173_v16 = vsel %vm1522_vm6, %v2149_v48, 0.0  ;;  %v2150_v18 = vmul.f32 %v4238_v62, %v4238_v62 }
 0x853   : > { %v3302_v46 = vpop.eup %3301  ;;  %3313 = vpow2.f32 %v2111_v38  ;;  %2174 = vadd.xlane.f32.xlu0 %v2173_v16  ;;  %v2179_v30 = vsel %vm1522_vm6, %v2151_v37, 0.0  ;;  %v2182_v14 = vsel %vm1522_vm6, %v2152_v15, 0.0  ;;  %vm2077_vm7 = vcmp.gt.f32.partialorder %v4226_v25, 0.0 }
 0x854   : > { %v3304_v39 = vpop.eup %3303  ;;  %v2625_v63 = vadd.f32 -1.0, %v3302_v46  ;;  %3315 = vpow2.f32 %v2107_v41  ;;  %v2176_v34 = vsel %vm1522_vm6, %v2150_v18, 0.0  ;;  %vm2078_vm2 = vcmp.gt.f32.partialorder %v2053_v29, 0.0 }
 0x855   : > { %v3306_v1 = vpop.eup %3305  ;;  %v2623_v26 = vadd.f32 -1.0, %v3304_v39  ;;  %2177 = vadd.xlane.f32.xlu1 %v2176_v34  ;;  %vm2080_vm8 = vcmp.gt.f32.partialorder %v4233_v4, 0.0 }
 0x856   : > { %v3308_v43 = vpop.eup %3307  ;;  %v2626_v5 = vadd.f32 -1.0, %v3306_v1  ;;  %v4257_v33 = vsel %vm2075_vm0, %v4188_v23, %v2625_v63 }
 0x857   : > { %v4260_v49 = vsel %vm2073_vm3, %v4191_v57, %v2623_v26  ;;  %v2624_v45 = vadd.f32 -1.0, %v3308_v43  ;;  %2180 = vadd.xlane.f32.xlu0 %v2179_v30  ;;  %v2155_v23 = vmul.f32 %v4257_v33, %v4257_v33 }
 0x858   : > { %v2153_v53 = vmul.f32 %v4260_v49, %v4260_v49  ;;  %v4271_v13 = vsel %vm2076_vm5, %v4198_v22, %v2626_v5 }
 0x859   : > { %v4267_v31 = vsel %vm2074_vm4, %v4203_v40, %v2624_v45  ;;  %2183 = vadd.xlane.f32.xlu1 %v2182_v14  ;;  %v2156_v22 = vmul.f32 %v4271_v13, %v4271_v13  ;;  %v2191_v9 = vsel %vm1522_vm6, %v2155_v23, 0.0 }
 0x85a   : > { %v2185_v36 = vsel %vm1522_vm6, %v2153_v53, 0.0  ;;  %v2154_v28 = vmul.f32 %v4267_v31, %v4267_v31 }
 0x85b   : > { %v3310_v19 = vpop.eup %3309  ;;  %2186 = vadd.xlane.f32.xlu0 %v2185_v36  ;;  %v2194_v54 = vsel %vm1522_vm6, %v2156_v22, 0.0 }
 0x85c   : > { %v3312_v27 = vpop.eup %3311  ;;  %v2629_v57 = vadd.f32 -1.0, %v3310_v19  ;;  %v2188_v12 = vsel %vm1522_vm6, %v2154_v28, 0.0 }
 0x85d   : > { %v3314_v42 = vpop.eup %3313  ;;  %v2627_v51 = vadd.f32 -1.0, %v3312_v27  ;;  %2189 = vadd.xlane.f32.xlu1 %v2188_v12 }
 0x85e   : > { %v3316_v40 = vpop.eup %3315  ;;  %v2630_v56 = vadd.f32 -1.0, %v3314_v42  ;;  %v4285_v59 = vsel %vm2079_vm1, %v4219_v47, %v2629_v57 }
 0x85f   : > { %v4288_v8 = vsel %vm2077_vm7, %v4226_v25, %v2627_v51  ;;  %v2628_v7 = vadd.f32 -1.0, %v3316_v40  ;;  %2192 = vadd.xlane.f32.xlu0 %v2191_v9  ;;  %v2159_v44 = vmul.f32 %v4285_v59, %v4285_v59 }
 0x860   : > { %v2157_v11 = vmul.f32 %v4288_v8, %v4288_v8  ;;  %v4297_v0 = vsel %vm2080_vm8, %v4233_v4, %v2630_v56 }
 0x861   : > { %v4293_v17 = vsel %vm2078_vm2, %v2053_v29, %v2628_v7  ;;  %2195 = vadd.xlane.f32.xlu1 %v2194_v54  ;;  %v2160_v47 = vmul.f32 %v4297_v0, %v4297_v0  ;;  %v2203_v10 = vsel %vm1522_vm6, %v2159_v44, 0.0 }
 0x862   : > { %v2158_v21 = vmul.f32 %v4293_v17, %v4293_v17  ;;  %v2197_v35 = vsel %vm1522_vm6, %v2157_v11, 0.0 }
 0x863   : > { %2198 = vadd.xlane.f32.xlu0 %v2197_v35  ;;  %v2206_v3 = vsel %vm1522_vm6, %v2160_v47, 0.0 }
 0x864   : > { %v2200_v52 = vsel %vm1522_vm6, %v2158_v21, 0.0 }
 0x865   : > { %2201 = vadd.xlane.f32.xlu1 %v2200_v52 }
 0x867   : > { %2204 = vadd.xlane.f32.xlu0 %v2203_v10 }
 0x869   : > { %2207 = vadd.xlane.f32.xlu1 %v2206_v3 }
 0x8d8   : > { %v2163_v24 = vpop.xlane.xlu0 %2162 }
 0x8d9   : > { %v2209_v25 = vmax.f32 %v2163_v24, 1e-24 }
 0x8da   : > { %v2166_v55 = vpop.xlane.xlu1 %2165 }
 0x8db   : > { %3317 = vrsqrt.f32 %v2209_v25  ;;  %v2210_v4 = vmax.f32 %v2166_v55, 1e-24 }
 0x8dc   : > { %v2169_v48 = vpop.xlane.xlu0 %2168 }
 0x8dd   : > { %v2211_v38 = vmax.f32 %v2169_v48, 1e-24  ;;  %3319 = vrsqrt.f32 %v2210_v4 }
 0x8de   : > { %v2172_v60 = vpop.xlane.xlu1 %2171 }
 0x8df   : > { %3321 = vrsqrt.f32 %v2211_v38  ;;  %v2212_v29 = vmax.f32 %v2172_v60, 1e-24 }
 0x8e0   : > { %v2175_v41 = vpop.xlane.xlu0 %2174 }
 0x8e1   : > { %v2213_v16 = vmax.f32 %v2175_v41, 1e-24  ;;  %3323 = vrsqrt.f32 %v2212_v29 }
 0x8e2   : > { %v2178_v46 = vpop.xlane.xlu1 %2177 }
 0x8e3   : > { %3325 = vrsqrt.f32 %v2213_v16  ;;  %v2214_v18 = vmax.f32 %v2178_v46, 1e-24 }
 0x8e4   : > { %v2181_v37 = vpop.xlane.xlu0 %2180 }
 0x8e5   : > { %v3318_v39 = vpop.eup %3317  ;;  %v2215_v63 = vmax.f32 %v2181_v37, 1e-24  ;;  %3327 = vrsqrt.f32 %v2214_v18 }
 0x8e6   : > { %v2241_v1 = vmul.f32 %v3318_v39, %v4193_v32  ;;  %v2184_v26 = vpop.xlane.xlu1 %2183 }
 0x8e7   : > { %3329 = vrsqrt.f32 %v2215_v63  ;;  %v3320_v34 = vpop.eup %3319  ;;  %v2216_v15 = vmax.f32 %v2184_v26, 1e-24 }
 0x8e8   : > { %v2187_v43 = vpop.xlane.xlu0 %2186  ;;  %2257 = vst.msk [vmem:[%s4313_s22] sm:$0xff] %vm1522_vm6, %v2241_v1  ;;  %v2242_v45 = vmul.f32 %v3320_v34, %v4205_v61 }
 0x8e9   : > { %v3322_v5 = vpop.eup %3321  ;;  %v2217_v30 = vmax.f32 %v2187_v43, 1e-24  ;;  %3331 = vrsqrt.f32 %v2216_v15 }
 0x8ea   : > { %v2243_v53 = vmul.f32 %v3322_v5, %v4195_v50  ;;  %v2190_v14 = vpop.xlane.xlu1 %2189  ;;  %2258 = vst.msk [vmem:[%s4313_s22 + $0x8] sm:$0xff] %vm1522_vm6, %v2242_v45  ;;  %v2273_v32 = vpack.c.bf16 %v2242_v45, %v2241_v1 }
 0x8eb   : > { %3333 = vrsqrt.f32 %v2217_v30  ;;  %v3324_v36 = vpop.eup %3323  ;;  %v2218_v28 = vmax.f32 %v2190_v14, 1e-24 }
 0x8ec   : > { %v2193_v23 = vpop.xlane.xlu0 %2192  ;;  %2259 = vst.msk [vmem:[%s4313_s22 + $0x10] sm:$0xff] %vm1522_vm6, %v2243_v53  ;;  %3106 = vmatprep.subr.msk.bf16.mxu1 %vm1522_vm6, %v2273_v32  ;;  %3014 = vmatprep.mubr.msk.bf16.mxu1 %vm1522_vm6, %v2273_v32  ;;  %v2282_v50 = vsel %vm1522_vm6, %v2273_v32, 0  ;;  %v2244_v27 = vmul.f32 %v3324_v36, %v4207_v58 }
 0x8ed   : > { %v3326_v19 = vpop.eup %3325  ;;  %v2219_v61 = vmax.f32 %v2193_v23, 1e-24  ;;  %3335 = vrsqrt.f32 %v2218_v28  ;;  %2999 = vmatpush3.bf16.xpose.msra.mxu1 %v2282_v50 }
 0x8ee   : > { %v2245_v57 = vmul.f32 %v3326_v19, %v4222_v6  ;;  %v2196_v12 = vpop.xlane.xlu1 %2195  ;;  %2260 = vst.msk [vmem:[%s4313_s22 + $0x18] sm:$0xff] %vm1522_vm6, %v2244_v27  ;;  %v4331_v42 = vpack.c.bf16 %v2244_v27, %v2243_v53 }
 0x8ef   : > { %3337 = vrsqrt.f32 %v2219_v61  ;;  %v3328_v51 = vpop.eup %3327  ;;  %v2220_v22 = vmax.f32 %v2196_v12, 1e-24 }
 0x8f0   : > { %v2199_v40 = vpop.xlane.xlu0 %2198  ;;  %2261 = vst.msk [vmem:[%s4313_s22 + $0x20] sm:$0xff] %vm1522_vm6, %v2245_v57  ;;  %3107 = vmatprep.subr.msk.bf16.mxu1 %vm1522_vm6, %v4331_v42  ;;  %v2246_v6 = vmul.f32 %v3328_v51, %v4238_v62  ;;  %v2285_v52 = vsel %vm1522_vm6, %v4331_v42, 0 }
 0x8f1   : > { %v3330_v56 = vpop.eup %3329  ;;  %v2221_v58 = vmax.f32 %v2199_v40, 1e-24  ;;  %3339 = vrsqrt.f32 %v2220_v22 }
 0x8f2   : > { %v2247_v9 = vmul.f32 %v3330_v56, %v4229_v2  ;;  %v2202_v7 = vpop.xlane.xlu1 %2201  ;;  %2262 = vst.msk [vmem:[%s4313_s22 + $0x28] sm:$0xff] %vm1522_vm6, %v2246_v6  ;;  %v2275_v62 = vpack.c.bf16 %v2246_v6, %v2245_v57 }
 0x8f3   : > { %3341 = vrsqrt.f32 %v2221_v58  ;;  %v3332_v11 = vpop.eup %3331  ;;  %v2222_v54 = vmax.f32 %v2202_v7, 1e-24 }
 0x8f4   : > { %v2205_v21 = vpop.xlane.xlu0 %2204  ;;  %2263 = vst.msk [vmem:[%s4313_s22 + $0x30] sm:$0xff] %vm1522_vm6, %v2247_v9  ;;  %v2248_v2 = vmul.f32 %v3332_v11, %v4243_v20  ;;  %v2288_v48 = vsel %vm1522_vm6, %v2275_v62, 0 }
 0x8f5   : > { %v3334_v35 = vpop.eup %3333  ;;  %v2223_v44 = vmax.f32 %v2205_v21, 1e-24  ;;  %3343 = vrsqrt.f32 %v2222_v54  ;;  %3001 = vmatpush3.bf16.xpose.msra.mxu1 %v2285_v52 }
 0x8f6   : > { %v2249_v47 = vmul.f32 %v3334_v35, %v4260_v49  ;;  %v2208_v10 = vpop.xlane.xlu1 %2207  ;;  %3108 = vmatprep.subr.msk.bf16.mxu1 %vm1522_vm6, %v2275_v62  ;;  %2264 = vst.msk [vmem:[%s4313_s22 + $0x38] sm:$0xff] %vm1522_vm6, %v2248_v2  ;;  %v2276_v38 = vpack.c.bf16 %v2248_v2, %v2247_v9 }
 0x8f7   : > { %3345 = vrsqrt.f32 %v2223_v44  ;;  %v3336_v3 = vpop.eup %3335  ;;  %v2224_v24 = vmax.f32 %v2208_v10, 1e-24 }
 0x8f8   : > { %2265 = vst.msk [vmem:[%s4313_s22 + $0x40] sm:$0xff] %vm1522_vm6, %v2249_v47  ;;  %v2250_v20 = vmul.f32 %v3336_v3, %v4267_v31 }
 0x8f9   : > { %v3338_v25 = vpop.eup %3337  ;;  %3347 = vrsqrt.f32 %v2224_v24 }
 0x8fa   : > { %v2251_v55 = vmul.f32 %v3338_v25, %v4257_v33  ;;  %2266 = vst.msk [vmem:[%s4313_s22 + $0x48] sm:$0xff] %vm1522_vm6, %v2250_v20 }
 0x8fb   : > { %v3340_v49 = vpop.eup %3339 }
 0x8fc   : > { %2267 = vst.msk [vmem:[%s4313_s22 + $0x50] sm:$0xff] %vm1522_vm6, %v2251_v55  ;;  %v2252_v60 = vmul.f32 %v3340_v49, %v4271_v13  ;;  %v2291_v13 = vsel %vm1522_vm6, %v2276_v38, 0 }
 0x8fd   : > { %v3342_v4 = vpop.eup %3341  ;;  %3003 = vmatpush3.bf16.xpose.msra.mxu1 %v2288_v48 }
 0x8fe   : > { %v2253_v29 = vmul.f32 %v3342_v4, %v4288_v8  ;;  %3109 = vmatprep.subr.msk.bf16.mxu1 %vm1522_vm6, %v2276_v38  ;;  %2268 = vst.msk [vmem:[%s4313_s22 + $0x58] sm:$0xff] %vm1522_vm6, %v2252_v60  ;;  %v2277_v8 = vpack.c.bf16 %v2250_v20, %v2249_v47 }
 0x8ff   : > { %v3344_v33 = vpop.eup %3343 }
 0x900   : > { %2269 = vst.msk [vmem:[%s4313_s22 + $0x60] sm:$0xff] %vm1522_vm6, %v2253_v29  ;;  %v2254_v41 = vmul.f32 %v3344_v33, %v4293_v17  ;;  %v2294_v37 = vsel %vm1522_vm6, %v2277_v8, 0  ;;  %v2278_v17 = vpack.c.bf16 %v2252_v60, %v2251_v55 }
 0x901   : > { %v3346_v31 = vpop.eup %3345 }
 0x902   : > { %v2255_v16 = vmul.f32 %v3346_v31, %v4285_v59  ;;  %2270 = vst.msk [vmem:[%s4313_s22 + $0x68] sm:$0xff] %vm1522_vm6, %v2254_v41  ;;  %v2297_v59 = vsel %vm1522_vm6, %v2278_v17, 0  ;;  %v2279_v39 = vpack.c.bf16 %v2254_v41, %v2253_v29 }
 0x903   : > { %v3348_v46 = vpop.eup %3347 }
 0x904   : > { %2271 = vst.msk [vmem:[%s4313_s22 + $0x70] sm:$0xff] %vm1522_vm6, %v2255_v16  ;;  %v2256_v18 = vmul.f32 %v3348_v46, %v4297_v0  ;;  %v2300_v0 = vsel %vm1522_vm6, %v2279_v39, 0 }
 0x905   : > { %3005 = vmatpush3.bf16.xpose.msra.mxu1 %v2291_v13 }
 0x906   : > { %3110 = vmatprep.subr.msk.bf16.mxu1 %vm1522_vm6, %v2277_v8  ;;  %2272 = vst.msk [vmem:[%s4313_s22 + $0x78] sm:$0xff] %vm1522_vm6, %v2256_v18  ;;  %v2280_v63 = vpack.c.bf16 %v2256_v18, %v2255_v16 }
 0x908   : > { %v2303_v1 = vsel %vm1522_vm6, %v2280_v63, 0 }
 0x90d   : > { %3007 = vmatpush3.bf16.xpose.msra.mxu1 %v2294_v37 }
 0x90e   : > { %3111 = vmatprep.subr.msk.bf16.mxu1 %vm1522_vm6, %v2278_v17 }
 0x915   : > { %3009 = vmatpush3.bf16.xpose.msra.mxu1 %v2297_v59 }
 0x916   : > { %3112 = vmatprep.subr.msk.bf16.mxu1 %vm1522_vm6, %v2279_v39 }
 0x91d   : > { %3011 = vmatpush3.bf16.xpose.msra.mxu1 %v2300_v0 }
 0x91e   : > { %3113 = vmatprep.subr.msk.bf16.mxu1 %vm1522_vm6, %v2280_v63 }
 0x925   : > { %3013 = vmatpush3.bf16.xpose.msra.mxu1 %v2303_v1 }
 0x92c   : > { %3015 = vmatmul.mubr.msk.bf16.vlgmr.msra.gmra.mrb[20].mxu1 %vm1522_vm6, %v4331_v42 }
 0x92d   : > { %3018 = vmatprep.mubr.msk.bf16.mxu1 %vm1522_vm6, %v2275_v62 }
 0x934   : > { %3019 = vmatmul.mubr.msk.bf16.gmra.mrb[24].mxu1 %vm1522_vm6, %v2276_v38 }
 0x935   : > { %3022 = vmatprep.mubr.msk.bf16.mxu1 %vm1522_vm6, %v2277_v8 }
 0x93c   : > { %3023 = vmatmul.mubr.msk.bf16.gmra.mrb[28].mxu1 %vm1522_vm6, %v2278_v17 }
 0x93d   : > { %3026 = vmatprep.mubr.msk.bf16.mxu1 %vm1522_vm6, %v2279_v39 }
 0x944   : > { %3027 = vmatmul.mubr.msk.bf16.gmra.mrb[32].mxu1 %vm1522_vm6, %v2280_v63 }
 0x9ff   : > { %v3016_v26 = vpop.f32.mrb[20].mxu1 }
 0xa00   : > { %2404 = vst [vmem:[%s4396_s26 + $0x10] sm:$0xff] %v3016_v26  ;;  %v2339_v34 = vpop.f32.mrb[21].mxu1 }
 0xa01   : > { %2402 = vst [vmem:[%s4396_s26] sm:$0xff] %v2339_v34  ;;  %v3017_v15 = vpop.f32.mrb[22].mxu1 }
 0xa02   : > { %2405 = vst [vmem:[%s4396_s26 + $0x18] sm:$0xff] %v3017_v15  ;;  %v2342_v43 = vpop.f32.mrb[23].mxu1 }
 0xa03   : > { %2403 = vst [vmem:[%s4396_s26 + $0x8] sm:$0xff] %v2342_v43 }
 0xa07   : > { %v3020_v5 = vpop.f32.mrb[24].mxu1 }
 0xa08   : > { %2408 = vst [vmem:[%s4396_s26 + $0x30] sm:$0xff] %v3020_v5  ;;  %v2355_v30 = vpop.f32.mrb[25].mxu1 }
 0xa09   : > { %2406 = vst [vmem:[%s4396_s26 + $0x20] sm:$0xff] %v2355_v30  ;;  %v3021_v45 = vpop.f32.mrb[26].mxu1 }
 0xa0a   : > { %2409 = vst [vmem:[%s4396_s26 + $0x38] sm:$0xff] %v3021_v45  ;;  %v2358_v53 = vpop.f32.mrb[27].mxu1 }
 0xa0b   : > { %2407 = vst [vmem:[%s4396_s26 + $0x28] sm:$0xff] %v2358_v53 }
 0xa0f   : > { %v3024_v14 = vpop.f32.mrb[28].mxu1 }
 0xa10   : > { %2412 = vst [vmem:[%s4396_s26 + $0x50] sm:$0xff] %v3024_v14  ;;  %v2371_v32 = vpop.f32.mrb[29].mxu1 }
 0xa11   : > { %2410 = vst [vmem:[%s4396_s26 + $0x40] sm:$0xff] %v2371_v32  ;;  %v3025_v36 = vpop.f32.mrb[30].mxu1 }
 0xa12   : > { %2413 = vst [vmem:[%s4396_s26 + $0x58] sm:$0xff] %v3025_v36  ;;  %v2374_v28 = vpop.f32.mrb[31].mxu1 }
 0xa13   : > { %2411 = vst [vmem:[%s4396_s26 + $0x48] sm:$0xff] %v2374_v28 }
 0xa17   : > { %v3028_v23 = vpop.f32.mrb[32].mxu1 }
 0xa18   : > { %2416 = vst [vmem:[%s4396_s26 + $0x70] sm:$0xff] %v3028_v23  ;;  %v2387_v19 = vpop.f32.mrb[33].mxu1 }
 0xa19   : > { %2414 = vst [vmem:[%s4396_s26 + $0x60] sm:$0xff] %v2387_v19  ;;  %v3029_v61 = vpop.f32.mrb[34].mxu1 }
 0xa1a   : > { %2417 = vst [vmem:[%s4396_s26 + $0x78] sm:$0xff] %v3029_v61  ;;  %v2390_v50 = vpop.f32.mrb[35].mxu1 }
 0xa1b   : > { %2415 = vst [vmem:[%s4396_s26 + $0x68] sm:$0xff] %v2390_v50 }
 0xa1c PF: > { %s21_s13 = sadd.s32 1, %s3371_s13  }
 0xa1d   : > { %p18_p4 = scmp.ge.s32.totalorder %s21_s13, 4  }
 0xa1f   :  { %20 = sbr.rel (!%p18_p4) target bundleno = 1 (0x1), region = 101 }

</bundles_post_ra>
